<compile_context>
chip_gen: v5e
topology: v5e:2x2
jax: 0.10.0
libtpu: 0.0.40
codegen_flags: <defaults>
</compile_context>

<pallas_src>
import jax
import jax.numpy as jnp
from jax.experimental import pallas as pl
from jax.experimental.pallas import tpu as pltpu


def _round_up(x, m):
    return ((x + m - 1) // m) * m


def actor_mlp_kernel(obs_ref, w1_ref, b1_ref, w2_ref, b2_ref, w3_ref, b3_ref,
                     out_ref):
    # Layer 1: Linear + ReLU  (Dropout = identity in eval mode).
    x = obs_ref[...].astype(jnp.bfloat16)            # bf16 feed for the MXU
    h1 = jnp.dot(x, w1_ref[...], preferred_element_type=jnp.float32)
    h1 = jnp.maximum(h1 + b1_ref[...], 0.0)          # f32 VPU math
    # Layer 2: Linear + ReLU  (Dropout = identity in eval mode).
    h2 = jnp.dot(h1.astype(jnp.bfloat16), w2_ref[...],
                 preferred_element_type=jnp.float32)
    h2 = jnp.maximum(h2 + b2_ref[...], 0.0)
    # Layer 3: Linear + Tanh (output padded to 128 lanes -> dense stores).
    out = jnp.dot(h2.astype(jnp.bfloat16), w3_ref[...],
                  preferred_element_type=jnp.float32)
    out_ref[...] = jnp.tanh(out + b3_ref[...])


def actor_forward(obs, padded_params, act_size, batch_tile=256):
    """obs: (B, obs_size) f32.  padded_params: lane-padded bf16 W / f32 b."""
    w1, b1 = padded_params["w1"], padded_params["b1"]
    w2, b2 = padded_params["w2"], padded_params["b2"]
    w3, b3 = padded_params["w3"], padded_params["b3"]

    B, obs_feat = obs.shape
    obs_p = w1.shape[0]          # lane-padded obs feature width
    out_p = w3.shape[1]          # lane-padded output width (>= 128)

    # Batch tile: sublane-aligned, capped at `batch_tile` rows per grid step.
    bm = min(batch_tile, _round_up(B, 8))
    b_pad = _round_up(B, bm)

    # Zero-pad obs (exact: padded weight rows are zero too).
    obs_padded = jnp.zeros((b_pad, obs_p), jnp.float32)
    obs_padded = obs_padded.at[:B, :obs_feat].set(obs)

    const = lambda i: (0, 0)     # weights: fixed block -> VMEM-resident

    out = pl.pallas_call(
        actor_mlp_kernel,
        out_shape=jax.ShapeDtypeStruct((b_pad, out_p), jnp.float32),
        grid=(b_pad // bm,),
        in_specs=[
            pl.BlockSpec((bm, obs_p), lambda i: (i, 0)),
            pl.BlockSpec(w1.shape, const), pl.BlockSpec(b1.shape, const),
            pl.BlockSpec(w2.shape, const), pl.BlockSpec(b2.shape, const),
            pl.BlockSpec(w3.shape, const), pl.BlockSpec(b3.shape, const),
        ],
        out_specs=pl.BlockSpec((bm, out_p), lambda i: (i, 0)),
        compiler_params=pltpu.CompilerParams(
            dimension_semantics=("parallel",),
            vmem_limit_bytes=8 << 20),
    )(obs_padded, w1, b1, w2, b2, w3, b3)

    return out[:B, :act_size]


def init_params(key, obs_size, act_size):
    """Deterministic init mimicking PyTorch's default Linear init
    (uniform in [-1/sqrt(fan_in), 1/sqrt(fan_in)]).  Unpadded f32."""
    dims = [(obs_size, 400), (400, 300), (300, act_size)]
    params = {}
    for i, (fan_in, fan_out) in enumerate(dims, start=1):
        key, kw, kb = jax.random.split(key, 3)
        bound = 1.0 / jnp.sqrt(jnp.float32(fan_in))
        params[f"w{i}"] = jax.random.uniform(
            kw, (fan_in, fan_out), jnp.float32, -bound, bound)
        params[f"b{i}"] = jax.random.uniform(
            kb, (1, fan_out), jnp.float32, -bound, bound)
    return params


def pad_and_cast_params(params, obs_size, act_size):
    """Zero-pad all feature dims to multiples of 128 (numerically exact) and
    cast weights to bf16 (half the DMA bytes, native MXU dtype).  Biases stay
    f32 for the VPU epilogue."""
    dims = [(obs_size, 400), (400, 300), (300, act_size)]
    padded = {}
    for i, (fi, fo) in enumerate(dims, start=1):
        fi_p, fo_p = _round_up(fi, 128), _round_up(fo, 128)
        w = jnp.zeros((fi_p, fo_p), jnp.float32).at[:fi, :fo].set(
            params[f"w{i}"])
        b = jnp.zeros((1, fo_p), jnp.float32).at[:, :fo].set(params[f"b{i}"])
        padded[f"w{i}"] = w.astype(jnp.bfloat16)
        padded[f"b{i}"] = b
    return padded


def reference_forward(obs, p):
    """Pure-JAX reference mirroring the kernel's bf16-weight / f32-accumulate
    numerics (on the unpadded parameters)."""
    def mm(x, w):
        return jnp.dot(x.astype(jnp.bfloat16), w.astype(jnp.bfloat16),
                       preferred_element_type=jnp.float32)
    h1 = jnp.maximum(mm(obs, p["w1"]) + p["b1"], 0.0)
    h2 = jnp.maximum(mm(h1, p["w2"]) + p["b2"], 0.0)
    return jnp.tanh(mm(h2, p["w3"]) + p["b3"])


if __name__ == "__main__":
    # obs_size = num_beams (270) + 2 extra features + 2 = 274; act_size = 2
    # (velocity, omega).  Small batch for the demo.
    OBS_SIZE = 274
    ACT_SIZE = 2
    BATCH = 8

    key = jax.random.PRNGKey(0)
    key, k_obs = jax.random.split(key)
    obs = jax.random.normal(k_obs, (BATCH, OBS_SIZE), jnp.float32)

    params = init_params(key, OBS_SIZE, ACT_SIZE)
    padded = pad_and_cast_params(params, OBS_SIZE, ACT_SIZE)

    out = actor_forward(obs, padded, ACT_SIZE)
    out = jax.block_until_ready(out)

    ref = jax.block_until_ready(reference_forward(obs, params))
    assert out.shape == (BATCH, ACT_SIZE)
    assert jnp.allclose(out, ref, atol=1e-4, rtol=1e-4), (
        float(jnp.max(jnp.abs(out - ref))))

    print("KERNEL_OK")
</pallas_src>

<mosaic_0001>
module attributes {stable_mosaic.version = 11 : i64} {
  func.func @actor_mlp_kernel(%arg0: i32, %arg1: memref<8x384xf32, #tpu.memory_space<vmem>>, %arg2: memref<384x512xbf16, #tpu.memory_space<vmem>>, %arg3: memref<1x512xf32, #tpu.memory_space<vmem>>, %arg4: memref<512x384xbf16, #tpu.memory_space<vmem>>, %arg5: memref<1x384xf32, #tpu.memory_space<vmem>>, %arg6: memref<384x128xbf16, #tpu.memory_space<vmem>>, %arg7: memref<1x128xf32, #tpu.memory_space<vmem>>, %arg8: memref<8x128xf32, #tpu.memory_space<vmem>>) attributes {dimension_semantics = [#tpu.dimension_semantics<parallel>], iteration_bounds = array<i64: 1>, scalar_prefetch = 0 : i64, scratch_operands = 0 : i64, tpu.core_type = #tpu.core_type<tc>, window_params = [{transform_indices = @transform_0, window_bounds = array<i64: 8, 384>}, {pipeline_mode = #tpu.pipeline_mode<synchronous>, transform_indices = @transform_1, window_bounds = array<i64: 384, 512>}, {pipeline_mode = #tpu.pipeline_mode<synchronous>, transform_indices = @transform_2, window_bounds = array<i64: 1, 512>}, {pipeline_mode = #tpu.pipeline_mode<synchronous>, transform_indices = @transform_3, window_bounds = array<i64: 512, 384>}, {pipeline_mode = #tpu.pipeline_mode<synchronous>, transform_indices = @transform_4, window_bounds = array<i64: 1, 384>}, {pipeline_mode = #tpu.pipeline_mode<synchronous>, transform_indices = @transform_5, window_bounds = array<i64: 384, 128>}, {pipeline_mode = #tpu.pipeline_mode<synchronous>, transform_indices = @transform_6, window_bounds = array<i64: 1, 128>}, {transform_indices = @transform_7, window_bounds = array<i64: 8, 128>}]} {
    %c0 = arith.constant 0 : index
    %c0_0 = arith.constant 0 : index
    %0 = vector.load %arg1[%c0, %c0_0] : memref<8x384xf32, #tpu.memory_space<vmem>>, vector<8x384xf32>
    %1 = arith.truncf %0 : vector<8x384xf32> to vector<8x384xbf16>
    %c0_1 = arith.constant 0 : index
    %c0_2 = arith.constant 0 : index
    %2 = vector.load %arg2[%c0_1, %c0_2] : memref<384x512xbf16, #tpu.memory_space<vmem>>, vector<384x512xbf16>
    %cst = arith.constant dense<0.000000e+00> : vector<8x512xf32>
    %3 = tpu.matmul %1, %2, %cst {dimension_numbers = #tpu.dot_dimension_numbers<[1], [0], [0], [1], [0, 0, 1, 1], [], []>} : vector<8x384xbf16>, vector<384x512xbf16>, vector<8x512xf32> -> vector<8x512xf32>
    %c0_3 = arith.constant 0 : index
    %c0_4 = arith.constant 0 : index
    %4 = vector.load %arg3[%c0_3, %c0_4] : memref<1x512xf32, #tpu.memory_space<vmem>>, vector<1x512xf32>
    %5 = vector.broadcast %4 : vector<1x512xf32> to vector<8x512xf32>
    %6 = arith.addf %3, %5 : vector<8x512xf32>
    %cst_5 = arith.constant 0.000000e+00 : f32
    %7 = vector.broadcast %cst_5 : f32 to vector<8x512xf32>
    %8 = arith.maximumf %6, %7 : vector<8x512xf32>
    %9 = arith.truncf %8 : vector<8x512xf32> to vector<8x512xbf16>
    %c0_6 = arith.constant 0 : index
    %c0_7 = arith.constant 0 : index
    %10 = vector.load %arg4[%c0_6, %c0_7] : memref<512x384xbf16, #tpu.memory_space<vmem>>, vector<512x384xbf16>
    %cst_8 = arith.constant dense<0.000000e+00> : vector<8x384xf32>
    %11 = tpu.matmul %9, %10, %cst_8 {dimension_numbers = #tpu.dot_dimension_numbers<[1], [0], [0], [1], [0, 0, 1, 1], [], []>} : vector<8x512xbf16>, vector<512x384xbf16>, vector<8x384xf32> -> vector<8x384xf32>
    %c0_9 = arith.constant 0 : index
    %c0_10 = arith.constant 0 : index
    %12 = vector.load %arg5[%c0_9, %c0_10] : memref<1x384xf32, #tpu.memory_space<vmem>>, vector<1x384xf32>
    %13 = vector.broadcast %12 : vector<1x384xf32> to vector<8x384xf32>
    %14 = arith.addf %11, %13 : vector<8x384xf32>
    %cst_11 = arith.constant 0.000000e+00 : f32
    %15 = vector.broadcast %cst_11 : f32 to vector<8x384xf32>
    %16 = arith.maximumf %14, %15 : vector<8x384xf32>
    %17 = arith.truncf %16 : vector<8x384xf32> to vector<8x384xbf16>
    %c0_12 = arith.constant 0 : index
    %c0_13 = arith.constant 0 : index
    %18 = vector.load %arg6[%c0_12, %c0_13] : memref<384x128xbf16, #tpu.memory_space<vmem>>, vector<384x128xbf16>
    %cst_14 = arith.constant dense<0.000000e+00> : vector<8x128xf32>
    %19 = tpu.matmul %17, %18, %cst_14 {dimension_numbers = #tpu.dot_dimension_numbers<[1], [0], [0], [1], [0, 0, 1, 1], [], []>} : vector<8x384xbf16>, vector<384x128xbf16>, vector<8x128xf32> -> vector<8x128xf32>
    %c0_15 = arith.constant 0 : index
    %c0_16 = arith.constant 0 : index
    %20 = vector.load %arg7[%c0_15, %c0_16] : memref<1x128xf32, #tpu.memory_space<vmem>>, vector<1x128xf32>
    %21 = vector.broadcast %20 : vector<1x128xf32> to vector<8x128xf32>
    %22 = arith.addf %19, %21 : vector<8x128xf32>
    %23 = math.tanh %22 : vector<8x128xf32>
    %c0_17 = arith.constant 0 : index
    %c0_18 = arith.constant 0 : index
    %24 = vector.load %arg8[%c0_17, %c0_18] : memref<8x128xf32, #tpu.memory_space<vmem>>, vector<8x128xf32>
    tpu.vector_store %arg8[%c0_17, %c0_18], %23 {strides = array<i32>} : memref<8x128xf32, #tpu.memory_space<vmem>>, vector<8x128xf32>,
    return
  }
  func.func @transform_0(%arg0: i32) -> (i32, i32) {
    %c0_i32 = arith.constant 0 : i32
    %c0_i32_0 = arith.constant 0 : i32
    return %arg0, %c0_i32 : i32, i32
  }
  func.func @transform_1(%arg0: i32) -> (i32, i32) {
    %c0_i32 = arith.constant 0 : i32
    %c0_i32_0 = arith.constant 0 : i32
    %c0_i32_1 = arith.constant 0 : i32
    return %c0_i32, %c0_i32_0 : i32, i32
  }
  func.func @transform_2(%arg0: i32) -> (i32, i32) {
    %c0_i32 = arith.constant 0 : i32
    %c0_i32_0 = arith.constant 0 : i32
    %c0_i32_1 = arith.constant 0 : i32
    return %c0_i32, %c0_i32_0 : i32, i32
  }
  func.func @transform_3(%arg0: i32) -> (i32, i32) {
    %c0_i32 = arith.constant 0 : i32
    %c0_i32_0 = arith.constant 0 : i32
    %c0_i32_1 = arith.constant 0 : i32
    return %c0_i32, %c0_i32_0 : i32, i32
  }
  func.func @transform_4(%arg0: i32) -> (i32, i32) {
    %c0_i32 = arith.constant 0 : i32
    %c0_i32_0 = arith.constant 0 : i32
    %c0_i32_1 = arith.constant 0 : i32
    return %c0_i32, %c0_i32_0 : i32, i32
  }
  func.func @transform_5(%arg0: i32) -> (i32, i32) {
    %c0_i32 = arith.constant 0 : i32
    %c0_i32_0 = arith.constant 0 : i32
    %c0_i32_1 = arith.constant 0 : i32
    return %c0_i32, %c0_i32_0 : i32, i32
  }
  func.func @transform_6(%arg0: i32) -> (i32, i32) {
    %c0_i32 = arith.constant 0 : i32
    %c0_i32_0 = arith.constant 0 : i32
    %c0_i32_1 = arith.constant 0 : i32
    return %c0_i32, %c0_i32_0 : i32, i32
  }
  func.func @transform_7(%arg0: i32) -> (i32, i32) {
    %c0_i32 = arith.constant 0 : i32
    %c0_i32_0 = arith.constant 0 : i32
    return %arg0, %c0_i32 : i32, i32
  }
}

</mosaic_0001>

<bundles_post_ra>
// kernel: tpu_custom_call.1
= control target key start
LH: loop header
LB: loop body
LE: loop exit
PB: predicated region body
PF: predicated region fallthrough
CT: control target
= control target key end

     0   :  { %12 = vsyncpa [#allocation3], 0  ;;  %s3294_s0 = inlined_call_operand.hbm [shape: f32[8,384], index: 0, kind: input, shape index: {}]   ;;  %s3295_s1 = inlined_call_operand.hbm [shape: bf16[384,512], index: 1, kind: input, shape index: {}]   ;;  %s3296_s2 = inlined_call_operand.hbm [shape: f32[1,512], index: 2, kind: input, shape index: {}]   ;;  %s3297_s3 = inlined_call_operand.hbm [shape: bf16[512,384], index: 3, kind: input, shape index: {}]   ;;  %s3298_s4 = inlined_call_operand.vmem [shape: f32[1,384], index: 4, kind: input, shape index: {}]   ;;  %s3299_s5 = inlined_call_operand.hbm [shape: bf16[384,128], index: 5, kind: input, shape index: {}]   ;;  %s3300_s6 = inlined_call_operand.vmem [shape: f32[1,128], index: 6, kind: input, shape index: {}]   ;;  %s3301_s7 = inlined_call_operand.hbm [shape: f32[8,128], index: 7, kind: output, shape index: {}]  }
   0x1   :  { %13 = vsyncpa [#allocation6], 0 }
   0x2   :  { %14 = vsyncpa [#allocation9], 0  ;;  %s31_s26 = sshll.u32 %s3295_s1, 4  ;;  %s32_s26 = int_to_ptr.hbm [resolvable:$true] %s31_s26 }
   0x3   :  { %15 = vsyncpa [#allocation4], 0  ;;  %s3170_s27 = smov [#allocation5]   ;;  %s55_s8 = sshll.u32 %s3297_s3, 4  ;;  %s56_s8 = int_to_ptr.hbm [resolvable:$true] %s55_s8 }
   0x4   :  { %s33_s28 = sshll.u32 %s3170_s27, 4  ;;  %s3171_s9 = smov 256   ;;  %s34_s28 = int_to_ptr.vmem [resolvable:$true] %s33_s28 }
   0x5   :  { %s3172_s10 = smov 16   ;;  %s3173_s11 = smov [#allocation8]  }
   0x6   :  { %39 = dma.hbm_to_vmem [thread:$0]  %s32_s26, 12288, %s34_s28, [#allocation6], %s3171_s9, %s3171_s9, %s3172_s10  }
   0x7   :  { %s57_s12 = sshll.u32 %s3173_s11, 4  ;;  %s3174_s13 = smov 192   ;;  %s58_s12 = int_to_ptr.vmem [resolvable:$true] %s57_s12 }
   0x8   :  { %s3175_s14 = smov 12   ;;  %s21_s16 = sshll.u32 %s3294_s0, 4  ;;  %s22_s16 = int_to_ptr.hbm [resolvable:$true] %s21_s16 }
   0x9   :  { %63 = dma.hbm_to_vmem [thread:$0]  %s56_s8, 12288, %s58_s12, [#allocation9], %s3174_s13, %s3174_s13, %s3175_s14  }
   0xa   :  { %s3176_s17 = smov [#allocation2]   ;;  %s45_s20 = sshll.u32 %s3296_s2, 4  ;;  %s46_s20 = int_to_ptr.hbm [resolvable:$true] %s45_s20 }
   0xb   :  { %s23_s18 = sshll.u32 %s3176_s17, 4  ;;  %s3177_s21 = smov [#allocation7]   ;;  %s24_s18 = int_to_ptr.vmem [resolvable:$true] %s23_s18 }
   0xc   :  { %26 = dma.hbm_to_vmem [thread:$0]  %s22_s16, 384, %s24_s18, [#allocation3]  }
   0xd   :  { %s47_s22 = sshll.u32 %s3177_s21, 4  ;;  %s70_s25 = sshll.u32 %s3299_s5, 4  ;;  %s48_s22 = int_to_ptr.vmem [resolvable:$true] %s47_s22  ;;  %s71_s25 = int_to_ptr.hbm [resolvable:$true] %s70_s25 }
   0xe   :  { %50 = dma.hbm_to_vmem [thread:$0]  %s46_s20, 64, %s48_s22, [#allocation6]  }
   0xf   :  { %s3178_s0 = smov [#allocation10]   ;;  %s3179_s27 = smov 64  }
  0x10   :  { %s72_s26 = sshll.u32 %s3178_s0, 4  ;;  %s3180_s28 = smov 4   ;;  %s73_s26 = int_to_ptr.vmem [resolvable:$true] %s72_s26 }
  0x11   :  { %78 = dma.hbm_to_vmem [thread:$0]  %s71_s25, 3072, %s73_s26, [#allocation9], %s3179_s27, %s3179_s27, %s3180_s28  }
  0x12   :  { %3162 = dma.done.wait [#allocation3], 384  }
  0x13   :  { %3163 = vsyncadd [#allocation3], 4294966912 }
  0x14   :  { %3164 = dma.done.wait [#allocation6], 12352  }
  0x15   :  { %3165 = vsyncadd [#allocation6], 4294954944 }
  0x16   :  { %3166 = dma.done.wait [#allocation9], 15360  }
  0x17   :  { %3167 = vsyncadd [#allocation9], 4294951936  ;;  %v2037_v0 = vld [vmem:[#allocation5 + $0xe0] sm:$0xf]  ;;  %v2817_v1 = vld [vmem:[#allocation5 + $0xec] sm:$0xf0] }
  0x18   :  { %v2165_v2 = vld [vmem:[#allocation5 + $0x1e0] sm:$0xf]  ;;  %v2038_v3 = vor.u32 %v2817_v1, %v2037_v0  ;;  %v2849_v4 = vld [vmem:[#allocation5 + $0x1ec] sm:$0xf0]  ;;  %v2815_v9 = vld [vmem:[#allocation5 + $0xe4] sm:$0xf] }
  0x19   :  { %v2293_v5 = vld [vmem:[#allocation5 + $0x2e0] sm:$0xf]  ;;  %v2881_v6 = vld [vmem:[#allocation5 + $0x2ec] sm:$0xf0]  ;;  %v2166_v7 = vor.u32 %v2849_v4, %v2165_v2  ;;  %v2039_v10 = vld [vmem:[#allocation5 + $0xf0] sm:$0xf0] }
  0x1a   :  { %v2294_v8 = vor.u32 %v2881_v6, %v2293_v5  ;;  %v2021_v11 = vld [vmem:[#allocation5 + $0xc0] sm:$0xf]  ;;  %693 = vmatpush.bf16.msra.mxu0 %v2038_v3  ;;  %v2042_v12 = vor.u32 %v2815_v9, %v2039_v10  ;;  %v2813_v13 = vld [vmem:[#allocation5 + $0xcc] sm:$0xf0]  ;;  %v2811_v20 = vld [vmem:[#allocation5 + $0xc4] sm:$0xf] }
  0x1b   :  { %v2149_v14 = vld [vmem:[#allocation5 + $0x1c0] sm:$0xf]  ;;  %v2845_v15 = vld [vmem:[#allocation5 + $0x1cc] sm:$0xf0]  ;;  %706 = vmatpush.bf16.msra.mxu1 %v2166_v7  ;;  %v2022_v16 = vor.u32 %v2813_v13, %v2021_v11  ;;  %v2023_v22 = vld [vmem:[#allocation5 + $0xd0] sm:$0xf0] }
  0x1c   :  { %719 = vmatpush.bf16.msra.mxu2 %v2294_v8  ;;  %v2150_v17 = vor.u32 %v2845_v15, %v2149_v14  ;;  %v2277_v18 = vld [vmem:[#allocation5 + $0x2c0] sm:$0xf]  ;;  %v2877_v19 = vld [vmem:[#allocation5 + $0x2cc] sm:$0xf0]  ;;  %732 = vmatpush.bf16.msra.mxu3 %v2042_v12  ;;  %v2026_v25 = vor.u32 %v2811_v20, %v2023_v22  ;;  %v2807_v31 = vld [vmem:[#allocation5 + $0xa4] sm:$0xf] }
  0x1d   :  { %v2278_v21 = vor.u32 %v2877_v19, %v2277_v18  ;;  %v2005_v23 = vld [vmem:[#allocation5 + $0xa0] sm:$0xf]  ;;  %v2809_v24 = vld [vmem:[#allocation5 + $0xac] sm:$0xf0]  ;;  %v2007_v32 = vld [vmem:[#allocation5 + $0xb0] sm:$0xf0] }
  0x1e   :  { %v2133_v26 = vld [vmem:[#allocation5 + $0x1a0] sm:$0xf]  ;;  %v2841_v27 = vld [vmem:[#allocation5 + $0x1ac] sm:$0xf0]  ;;  %694 = vmatpush.bf16.msra.mxu0 %v2022_v16  ;;  %v2006_v29 = vor.u32 %v2809_v24, %v2005_v23  ;;  %v2010_v38 = vor.u32 %v2807_v31, %v2007_v32  ;;  %v2803_v42 = vld [vmem:[#allocation5 + $0x84] sm:$0xf] }
  0x1f   :  { %v2261_v28 = vld [vmem:[#allocation5 + $0x2a0] sm:$0xf]  ;;  %v2873_v30 = vld [vmem:[#allocation5 + $0x2ac] sm:$0xf0]  ;;  %707 = vmatpush.bf16.msra.mxu1 %v2150_v17  ;;  %v2134_v33 = vor.u32 %v2841_v27, %v2133_v26  ;;  %v1991_v43 = vld [vmem:[#allocation5 + $0x90] sm:$0xf0] }
  0x20   :  { %720 = vmatpush.bf16.msra.mxu2 %v2278_v21  ;;  %v2262_v34 = vor.u32 %v2873_v30, %v2261_v28  ;;  %v1989_v35 = vld [vmem:[#allocation5 + $0x80] sm:$0xf]  ;;  %v2805_v36 = vld [vmem:[#allocation5 + $0x8c] sm:$0xf0]  ;;  %733 = vmatpush.bf16.msra.mxu3 %v2026_v25  ;;  %v1994_v50 = vor.u32 %v2803_v42, %v1991_v43  ;;  %v2799_v54 = vld [vmem:[#allocation5 + $0x64] sm:$0xf] }
  0x21   :  { %v2117_v37 = vld [vmem:[#allocation5 + $0x180] sm:$0xf]  ;;  %v2837_v39 = vld [vmem:[#allocation5 + $0x18c] sm:$0xf0]  ;;  %v1990_v44 = vor.u32 %v2805_v36, %v1989_v35  ;;  %v1975_v55 = vld [vmem:[#allocation5 + $0x70] sm:$0xf0] }
  0x22   :  { %v2245_v40 = vld [vmem:[#allocation5 + $0x280] sm:$0xf]  ;;  %v2869_v41 = vld [vmem:[#allocation5 + $0x28c] sm:$0xf0]  ;;  %695 = vmatpush.bf16.msra.mxu0 %v2006_v29  ;;  %v2118_v45 = vor.u32 %v2837_v39, %v2117_v37  ;;  %v1978_v62 = vor.u32 %v2799_v54, %v1975_v55  ;;  %v2795_v2 = vld [vmem:[#allocation5 + $0x44] sm:$0xf] }
  0x23   :  { %708 = vmatpush.bf16.msra.mxu1 %v2134_v33  ;;  %v2246_v46 = vor.u32 %v2869_v41, %v2245_v40  ;;  %v1973_v47 = vld [vmem:[#allocation5 + $0x60] sm:$0xf]  ;;  %v2801_v48 = vld [vmem:[#allocation5 + $0x6c] sm:$0xf0]  ;;  %v1959_v3 = vld [vmem:[#allocation5 + $0x50] sm:$0xf0] }
  0x24   :  { %721 = vmatpush.bf16.msra.mxu2 %v2262_v34  ;;  %v2101_v49 = vld [vmem:[#allocation5 + $0x160] sm:$0xf]  ;;  %734 = vmatpush.bf16.msra.mxu3 %v2010_v38  ;;  %v2833_v51 = vld [vmem:[#allocation5 + $0x16c] sm:$0xf0]  ;;  %v1974_v56 = vor.u32 %v2801_v48, %v1973_v47  ;;  %v1962_v10 = vor.u32 %v2795_v2, %v1959_v3  ;;  %v2791_v14 = vld [vmem:[#allocation5 + $0x24] sm:$0xf] }
  0x25   :  { %v2229_v52 = vld [vmem:[#allocation5 + $0x260] sm:$0xf]  ;;  %v2865_v53 = vld [vmem:[#allocation5 + $0x26c] sm:$0xf0]  ;;  %v2102_v57 = vor.u32 %v2833_v51, %v2101_v49  ;;  %v1943_v15 = vld [vmem:[#allocation5 + $0x30] sm:$0xf0] }
  0x26   :  { %696 = vmatpush.bf16.msra.mxu0 %v1990_v44  ;;  %v2230_v58 = vor.u32 %v2865_v53, %v2229_v52  ;;  %v1957_v59 = vld [vmem:[#allocation5 + $0x40] sm:$0xf]  ;;  %v2797_v60 = vld [vmem:[#allocation5 + $0x4c] sm:$0xf0]  ;;  %v1946_v24 = vor.u32 %v2791_v14, %v1943_v15  ;;  %v2787_v26 = vld [vmem:[#allocation5 + $0x4] sm:$0xf] }
  0x27   :  { %709 = vmatpush.bf16.msra.mxu1 %v2118_v45  ;;  %v2085_v61 = vld [vmem:[#allocation5 + $0x140] sm:$0xf]  ;;  %v2829_v63 = vld [vmem:[#allocation5 + $0x14c] sm:$0xf0]  ;;  %v1958_v4 = vor.u32 %v2797_v60, %v1957_v59  ;;  %v1927_v27 = vld [vmem:[#allocation5 + $0x10] sm:$0xf0] }
  0x28   :  { %722 = vmatpush.bf16.msra.mxu2 %v2246_v46  ;;  %735 = vmatpush.bf16.msra.mxu3 %v1994_v50  ;;  %v2213_v0 = vld [vmem:[#allocation5 + $0x240] sm:$0xf]  ;;  %v2861_v1 = vld [vmem:[#allocation5 + $0x24c] sm:$0xf0]  ;;  %v2086_v5 = vor.u32 %v2829_v63, %v2085_v61  ;;  %v2847_v28 = vld [vmem:[#allocation5 + $0x1e4] sm:$0xf]  ;;  %v1930_v40 = vor.u32 %v2787_v26, %v1927_v27 }
  0x29   :  { %v2214_v6 = vor.u32 %v2861_v1, %v2213_v0  ;;  %v1941_v7 = vld [vmem:[#allocation5 + $0x20] sm:$0xf]  ;;  %v2793_v8 = vld [vmem:[#allocation5 + $0x2c] sm:$0xf0]  ;;  %v2167_v29 = vld [vmem:[#allocation5 + $0x1f0] sm:$0xf0] }
  0x2a   :  { %697 = vmatpush.bf16.msra.mxu0 %v1974_v56  ;;  %v2069_v9 = vld [vmem:[#allocation5 + $0x120] sm:$0xf]  ;;  %v2825_v11 = vld [vmem:[#allocation5 + $0x12c] sm:$0xf0]  ;;  %v1942_v16 = vor.u32 %v2793_v8, %v1941_v7  ;;  %v2879_v30 = vld [vmem:[#allocation5 + $0x2e4] sm:$0xf]  ;;  %v2170_v41 = vor.u32 %v2847_v28, %v2167_v29 }
  0x2b   :  { %710 = vmatpush.bf16.msra.mxu1 %v2102_v57  ;;  %v2197_v12 = vld [vmem:[#allocation5 + $0x220] sm:$0xf]  ;;  %v2857_v13 = vld [vmem:[#allocation5 + $0x22c] sm:$0xf0]  ;;  %v2070_v19 = vor.u32 %v2825_v11, %v2069_v9  ;;  %v2295_v32 = vld [vmem:[#allocation5 + $0x2f0] sm:$0xf0] }
  0x2c   :  { %723 = vmatpush.bf16.msra.mxu2 %v2230_v58  ;;  %736 = vmatpush.bf16.msra.mxu3 %v1978_v62  ;;  %v1925_v17 = vld [vmem:[#allocation5] sm:$0xf]  ;;  %v2789_v18 = vld [vmem:[#allocation5 + $0xc] sm:$0xf0]  ;;  %v2198_v20 = vor.u32 %v2857_v13, %v2197_v12  ;;  %v2045_v33 = vld [vmem:[#allocation5 + $0xe8] sm:$0xf]  ;;  %v2298_v44 = vor.u32 %v2879_v30, %v2295_v32 }
  0x2d   :  { %v2053_v21 = vld [vmem:[#allocation5 + $0x100] sm:$0xf]  ;;  %v2821_v22 = vld [vmem:[#allocation5 + $0x10c] sm:$0xf0]  ;;  %v1926_v31 = vor.u32 %v2789_v18, %v1925_v17  ;;  %v2818_v34 = vld [vmem:[#allocation5 + $0xf4] sm:$0xf0] }
  0x2e   :  { %698 = vmatpush.bf16.msra.mxu0 %v1958_v4  ;;  %v2181_v23 = vld [vmem:[#allocation5 + $0x200] sm:$0xf]  ;;  %v2853_v25 = vld [vmem:[#allocation5 + $0x20c] sm:$0xf0]  ;;  %v2054_v35 = vor.u32 %v2821_v22, %v2053_v21  ;;  %v2173_v37 = vld [vmem:[#allocation5 + $0x1e8] sm:$0xf]  ;;  %v2046_v45 = vor.u32 %v2818_v34, %v2045_v33 }
  0x2f   :  { %711 = vmatpush.bf16.msra.mxu1 %v2086_v5  ;;  %v2182_v36 = vor.u32 %v2853_v25, %v2181_v23  ;;  %v2850_v38 = vld [vmem:[#allocation5 + $0x1f4] sm:$0xf0]  ;;  %v101_v42 = vld [vmem:[#allocation2] sm:$0xff]  ;;  %v102_v43 = vld [vmem:[#allocation2 + $0x8] sm:$0xff]  ;;  %s3181_s30 = smov [#allocation11]   ;;  %s1911_s11 = sshll.u32 %s3301_s7, 4  ;;  %s1912_s11 = int_to_ptr.hbm [resolvable:$true] %s1911_s11 }
  0x30   :  { %724 = vmatpush.bf16.msra.mxu2 %v2214_v6  ;;  %737 = vmatpush.bf16.msra.mxu3 %v1962_v10  ;;  %v103_v39 = vld [vmem:[#allocation2 + $0x10] sm:$0xff]  ;;  %v2843_v46 = vld [vmem:[#allocation5 + $0x1c4] sm:$0xf]  ;;  %v2151_v47 = vld [vmem:[#allocation5 + $0x1d0] sm:$0xf0]  ;;  %v2174_v49 = vor.u32 %v2850_v38, %v2173_v37  ;;  %v3239_v54 = vpack.c.bf16 %v101_v42, %v101_v42  ;;  %v3241_v57 = vpack.c.bf16 %v102_v43, %v102_v43  ;;  %s1909_s8 = sshll.u32 %s3181_s30, 4  ;;  %s1910_s8 = int_to_ptr.vmem [resolvable:$true] %s1909_s8 }
  0x31   :  { %v2875_v48 = vld [vmem:[#allocation5 + $0x2c4] sm:$0xf]  ;;  %v3237_v50 = vpack.c.bf16 %v103_v39, %v103_v39  ;;  %v2279_v51 = vld [vmem:[#allocation5 + $0x2d0] sm:$0xf0]  ;;  %v2029_v52 = vld [vmem:[#allocation5 + $0xc8] sm:$0xf]  ;;  %v2154_v58 = vor.u32 %v2843_v46, %v2151_v47 }
  0x32   :  { %699 = vmatpush.bf16.msra.mxu0 %v1942_v16  ;;  %v2814_v53 = vld [vmem:[#allocation5 + $0xd4] sm:$0xf0]  ;;  %v2157_v55 = vld [vmem:[#allocation5 + $0x1c8] sm:$0xf]  ;;  %v2282_v59 = vor.u32 %v2875_v48, %v2279_v51  ;;  %v2839_v61 = vld [vmem:[#allocation5 + $0x1a4] sm:$0xf] }
  0x33   :  { %712 = vmatpush.bf16.msra.mxu1 %v2070_v19  ;;  %v2846_v56 = vld [vmem:[#allocation5 + $0x1d4] sm:$0xf0]  ;;  %v2030_v60 = vor.u32 %v2814_v53, %v2029_v52  ;;  %v2135_v62 = vld [vmem:[#allocation5 + $0x1b0] sm:$0xf0]  ;;  %v2871_v63 = vld [vmem:[#allocation5 + $0x2a4] sm:$0xf] }
  0x34   :  { %725 = vmatpush.bf16.msra.mxu2 %v2198_v20  ;;  %738 = vmatpush.bf16.msra.mxu3 %v1946_v24  ;;  %v2158_v0 = vor.u32 %v2846_v56, %v2157_v55  ;;  %v2263_v1 = vld [vmem:[#allocation5 + $0x2b0] sm:$0xf0]  ;;  %v2013_v2 = vld [vmem:[#allocation5 + $0xa8] sm:$0xf]  ;;  %v2810_v3 = vld [vmem:[#allocation5 + $0xb4] sm:$0xf0]  ;;  %v2138_v6 = vor.u32 %v2839_v61, %v2135_v62 }
  0x35   :  { %v2141_v4 = vld [vmem:[#allocation5 + $0x1a8] sm:$0xf]  ;;  %v2842_v5 = vld [vmem:[#allocation5 + $0x1b4] sm:$0xf0]  ;;  %v2266_v7 = vor.u32 %v2871_v63, %v2263_v1  ;;  %v2014_v8 = vor.u32 %v2810_v3, %v2013_v2  ;;  %v2835_v9 = vld [vmem:[#allocation5 + $0x184] sm:$0xf] }
  0x36   :  { %700 = vmatpush.bf16.msra.mxu0 %v1926_v31  ;;  %v2119_v10 = vld [vmem:[#allocation5 + $0x190] sm:$0xf0]  ;;  %v2867_v11 = vld [vmem:[#allocation5 + $0x284] sm:$0xf]  ;;  %v2142_v12 = vor.u32 %v2842_v5, %v2141_v4  ;;  %v1997_v14 = vld [vmem:[#allocation5 + $0x88] sm:$0xf] }
  0x37   :  { %713 = vmatpush.bf16.msra.mxu1 %v2054_v35  ;;  %v2247_v13 = vld [vmem:[#allocation5 + $0x290] sm:$0xf0]  ;;  %v2806_v15 = vld [vmem:[#allocation5 + $0x94] sm:$0xf0]  ;;  %v2125_v16 = vld [vmem:[#allocation5 + $0x188] sm:$0xf]  ;;  %v2122_v18 = vor.u32 %v2835_v9, %v2119_v10 }
  0x38   :  { %726 = vmatpush.bf16.msra.mxu2 %v2182_v36  ;;  %739 = vmatpush.bf16.msra.mxu3 %v1930_v40  ;;  %v2838_v17 = vld [vmem:[#allocation5 + $0x194] sm:$0xf0]  ;;  %v2250_v19 = vor.u32 %v2867_v11, %v2247_v13  ;;  %v1998_v20 = vor.u32 %v2806_v15, %v1997_v14  ;;  %v2831_v21 = vld [vmem:[#allocation5 + $0x164] sm:$0xf]  ;;  %v2103_v22 = vld [vmem:[#allocation5 + $0x170] sm:$0xf0] }
  0x39   :  { %701 = vmatmul.bf16.vlgmr.msra.gmra.mxu0 %v3239_v54  ;;  %v2863_v23 = vld [vmem:[#allocation5 + $0x264] sm:$0xf]  ;;  %v2126_v24 = vor.u32 %v2838_v17, %v2125_v16  ;;  %v2231_v25 = vld [vmem:[#allocation5 + $0x270] sm:$0xf0]  ;;  %v1981_v26 = vld [vmem:[#allocation5 + $0x68] sm:$0xf]  ;;  %v2106_v30 = vor.u32 %v2831_v21, %v2103_v22 }
  0x3a   :  { %745 = vmatpush.bf16.msrb.mxu0 %v2170_v41  ;;  %714 = vmatmul.bf16.vlgmr.msra.gmra.mxu1 %v3241_v57  ;;  %v2802_v27 = vld [vmem:[#allocation5 + $0x74] sm:$0xf0]  ;;  %v2109_v28 = vld [vmem:[#allocation5 + $0x168] sm:$0xf]  ;;  %v2234_v31 = vor.u32 %v2863_v23, %v2231_v25  ;;  %v2827_v33 = vld [vmem:[#allocation5 + $0x144] sm:$0xf] }
  0x3b   :  { %758 = vmatpush.bf16.msrb.mxu1 %v2298_v44  ;;  %727 = vmatmul.bf16.vlgmr.msra.gmra.mxu2 %v3237_v50  ;;  %v2834_v29 = vld [vmem:[#allocation5 + $0x174] sm:$0xf0]  ;;  %v1982_v32 = vor.u32 %v2802_v27, %v1981_v26  ;;  %v2087_v34 = vld [vmem:[#allocation5 + $0x150] sm:$0xf0]  ;;  %v2859_v35 = vld [vmem:[#allocation5 + $0x244] sm:$0xf] }
  0x3c   :  { %771 = vmatpush.bf16.msrb.mxu2 %v2046_v45  ;;  %784 = vmatpush.bf16.msrb.mxu3 %v2174_v49  ;;  %v2110_v36 = vor.u32 %v2834_v29, %v2109_v28  ;;  %v2215_v37 = vld [vmem:[#allocation5 + $0x250] sm:$0xf0]  ;;  %v1965_v38 = vld [vmem:[#allocation5 + $0x48] sm:$0xf]  ;;  %v2798_v39 = vld [vmem:[#allocation5 + $0x54] sm:$0xf0]  ;;  %v2090_v42 = vor.u32 %v2827_v33, %v2087_v34 }
  0x3d   :  { %740 = vmatmul.bf16.vlgmr.msra.gmra.mxu3 %v3239_v54  ;;  %v2093_v40 = vld [vmem:[#allocation5 + $0x148] sm:$0xf]  ;;  %v2830_v41 = vld [vmem:[#allocation5 + $0x154] sm:$0xf0]  ;;  %v2218_v43 = vor.u32 %v2859_v35, %v2215_v37  ;;  %v1966_v44 = vor.u32 %v2798_v39, %v1965_v38  ;;  %v2823_v45 = vld [vmem:[#allocation5 + $0x124] sm:$0xf] }
  0x3e   :  { %746 = vmatpush.bf16.msrb.mxu0 %v2154_v58  ;;  %v2071_v46 = vld [vmem:[#allocation5 + $0x130] sm:$0xf0]  ;;  %v2855_v47 = vld [vmem:[#allocation5 + $0x224] sm:$0xf]  ;;  %v2094_v48 = vor.u32 %v2830_v41, %v2093_v40  ;;  %v1949_v51 = vld [vmem:[#allocation5 + $0x28] sm:$0xf] }
  0x3f   :  { %759 = vmatpush.bf16.msrb.mxu1 %v2282_v59  ;;  %v2199_v49 = vld [vmem:[#allocation5 + $0x230] sm:$0xf0]  ;;  %v2794_v52 = vld [vmem:[#allocation5 + $0x34] sm:$0xf0]  ;;  %v2077_v53 = vld [vmem:[#allocation5 + $0x128] sm:$0xf]  ;;  %v2074_v56 = vor.u32 %v2823_v45, %v2071_v46 }
  0x40   :  { %772 = vmatpush.bf16.msrb.mxu2 %v2030_v60  ;;  %785 = vmatpush.bf16.msrb.mxu3 %v2158_v0  ;;  %v2826_v55 = vld [vmem:[#allocation5 + $0x134] sm:$0xf0]  ;;  %v2819_v58 = vld [vmem:[#allocation5 + $0x104] sm:$0xf]  ;;  %v2055_v59 = vld [vmem:[#allocation5 + $0x110] sm:$0xf0]  ;;  %v2202_v60 = vor.u32 %v2855_v47, %v2199_v49  ;;  %v1950_v61 = vor.u32 %v2794_v52, %v1949_v51 }
  0x41   :  { %v2851_v62 = vld [vmem:[#allocation5 + $0x204] sm:$0xf]  ;;  %v2183_v63 = vld [vmem:[#allocation5 + $0x210] sm:$0xf0]  ;;  %v1933_v0 = vld [vmem:[#allocation5 + $0x8] sm:$0xf]  ;;  %v2078_v1 = vor.u32 %v2826_v55, %v2077_v53 }
  0x42   :  { %747 = vmatpush.bf16.msrb.mxu0 %v2138_v6  ;;  %v2790_v2 = vld [vmem:[#allocation5 + $0x14] sm:$0xf0]  ;;  %v2061_v3 = vld [vmem:[#allocation5 + $0x108] sm:$0xf]  ;;  %v2047_v9 = vld [vmem:[#allocation5 + $0xf8] sm:$0xf0] }
  0x43   :  { %760 = vmatpush.bf16.msrb.mxu1 %v2266_v7  ;;  %v2822_v4 = vld [vmem:[#allocation5 + $0x114] sm:$0xf0]  ;;  %v2301_v5 = vld [vmem:[#allocation5 + $0x2e8] sm:$0xf]  ;;  %v2816_v7 = vld [vmem:[#allocation5 + $0xec] sm:$0xf]  ;;  %v1934_v13 = vor.u32 %v2790_v2, %v1933_v0 }
  0x44   :  { %773 = vmatpush.bf16.msrb.mxu2 %v2014_v8  ;;  %786 = vmatpush.bf16.msrb.mxu3 %v2142_v12  ;;  %v2882_v6 = vld [vmem:[#allocation5 + $0x2f4] sm:$0xf0]  ;;  %v2058_v8 = vor.u32 %v2819_v58, %v2055_v59  ;;  %v2848_v10 = vld [vmem:[#allocation5 + $0x1ec] sm:$0xf]  ;;  %v2175_v11 = vld [vmem:[#allocation5 + $0x1f8] sm:$0xf0]  ;;  %v2186_v12 = vor.u32 %v2851_v62, %v2183_v63  ;;  %v2062_v16 = vor.u32 %v2822_v4, %v2061_v3 }
  0x45   :  { %v2880_v14 = vld [vmem:[#allocation5 + $0x2ec] sm:$0xf]  ;;  %v2303_v15 = vld [vmem:[#allocation5 + $0x2f8] sm:$0xf0]  ;;  %v2302_v17 = vor.u32 %v2882_v6, %v2301_v5  ;;  %v2878_v21 = vld [vmem:[#allocation5 + $0x2d4] sm:$0xf0] }
  0x46   :  { %748 = vmatpush.bf16.msrb.mxu0 %v2122_v18  ;;  %v2050_v18 = vor.u32 %v2816_v7, %v2047_v9  ;;  %v2812_v22 = vld [vmem:[#allocation5 + $0xcc] sm:$0xf]  ;;  %v2306_v23 = vor.u32 %v2880_v14, %v2303_v15  ;;  %v2159_v26 = vld [vmem:[#allocation5 + $0x1d8] sm:$0xf0]  ;;  %v2874_v33 = vld [vmem:[#allocation5 + $0x2b4] sm:$0xf0] }
  0x47   :  { %761 = vmatpush.bf16.msrb.mxu1 %v2250_v19  ;;  %v2178_v19 = vor.u32 %v2848_v10, %v2175_v11  ;;  %v2844_v25 = vld [vmem:[#allocation5 + $0x1cc] sm:$0xf]  ;;  %v2287_v28 = vld [vmem:[#allocation5 + $0x2d8] sm:$0xf0]  ;;  %v2870_v45 = vld [vmem:[#allocation5 + $0x294] sm:$0xf0] }
  0x48   :  { %774 = vmatpush.bf16.msrb.mxu2 %v1998_v20  ;;  %787 = vmatpush.bf16.msrb.mxu3 %v2126_v24  ;;  %v2285_v20 = vld [vmem:[#allocation5 + $0x2c8] sm:$0xf]  ;;  %v2031_v24 = vld [vmem:[#allocation5 + $0xd8] sm:$0xf0]  ;;  %v2876_v27 = vld [vmem:[#allocation5 + $0x2cc] sm:$0xf] }
  0x49   :  { %v2286_v29 = vor.u32 %v2878_v21, %v2285_v20  ;;  %v2808_v34 = vld [vmem:[#allocation5 + $0xac] sm:$0xf]  ;;  %v2290_v35 = vor.u32 %v2876_v27, %v2287_v28  ;;  %v2143_v38 = vld [vmem:[#allocation5 + $0x1b8] sm:$0xf0]  ;;  %v2237_v59 = vld [vmem:[#allocation5 + $0x268] sm:$0xf] }
  0x4a   :  { %749 = vmatpush.bf16.msrb.mxu0 %v2106_v30  ;;  %v2034_v30 = vor.u32 %v2812_v22, %v2031_v24  ;;  %v2840_v37 = vld [vmem:[#allocation5 + $0x1ac] sm:$0xf]  ;;  %v2271_v40 = vld [vmem:[#allocation5 + $0x2b8] sm:$0xf0]  ;;  %v2221_v7 = vld [vmem:[#allocation5 + $0x248] sm:$0xf] }
  0x4b   :  { %762 = vmatpush.bf16.msrb.mxu1 %v2234_v31  ;;  %v2162_v31 = vor.u32 %v2844_v25, %v2159_v26  ;;  %v2872_v39 = vld [vmem:[#allocation5 + $0x2ac] sm:$0xf]  ;;  %v2127_v51 = vld [vmem:[#allocation5 + $0x198] sm:$0xf0]  ;;  %v2858_v20 = vld [vmem:[#allocation5 + $0x234] sm:$0xf0] }
  0x4c   :  { %775 = vmatpush.bf16.msrb.mxu2 %v1982_v32  ;;  %788 = vmatpush.bf16.msrb.mxu3 %v2110_v36  ;;  %v2269_v32 = vld [vmem:[#allocation5 + $0x2a8] sm:$0xf]  ;;  %v2015_v36 = vld [vmem:[#allocation5 + $0xb8] sm:$0xf0]  ;;  %v2804_v46 = vld [vmem:[#allocation5 + $0x8c] sm:$0xf]  ;;  %v2274_v47 = vor.u32 %v2872_v39, %v2271_v40 }
  0x4d   :  { %v2270_v41 = vor.u32 %v2874_v33, %v2269_v32  ;;  %v2836_v49 = vld [vmem:[#allocation5 + $0x18c] sm:$0xf]  ;;  %v2255_v53 = vld [vmem:[#allocation5 + $0x298] sm:$0xf0]  ;;  %v2854_v32 = vld [vmem:[#allocation5 + $0x214] sm:$0xf0] }
  0x4e   :  { %750 = vmatpush.bf16.msrb.mxu0 %v2090_v42  ;;  %v2018_v42 = vor.u32 %v2808_v34, %v2015_v36  ;;  %v2868_v52 = vld [vmem:[#allocation5 + $0x28c] sm:$0xf]  ;;  %v2130_v58 = vor.u32 %v2836_v49, %v2127_v51  ;;  %v1983_v63 = vld [vmem:[#allocation5 + $0x78] sm:$0xf0]  ;;  %v2381_v49 = vld [vmem:[#allocation8 + $0x90] sm:$0xf] }
  0x4f   :  { %763 = vmatpush.bf16.msrb.mxu1 %v2218_v43  ;;  %v2146_v43 = vor.u32 %v2840_v37, %v2143_v38  ;;  %v2258_v62 = vor.u32 %v2868_v52, %v2255_v53  ;;  %v2832_v0 = vld [vmem:[#allocation5 + $0x16c] sm:$0xf]  ;;  %v2239_v3 = vld [vmem:[#allocation5 + $0x278] sm:$0xf0]  ;;  %v2902_v51 = vld [vmem:[#allocation8 + $0x98] sm:$0xf0] }
  0x50   :  { %776 = vmatpush.bf16.msrb.mxu2 %v1966_v44  ;;  %789 = vmatpush.bf16.msrb.mxu3 %v2094_v48  ;;  %v2253_v44 = vld [vmem:[#allocation5 + $0x288] sm:$0xf]  ;;  %v1999_v48 = vld [vmem:[#allocation5 + $0x98] sm:$0xf0]  ;;  %v2864_v2 = vld [vmem:[#allocation5 + $0x26c] sm:$0xf] }
  0x51   :  { %v2254_v55 = vor.u32 %v2870_v45, %v2253_v44  ;;  %v2796_v9 = vld [vmem:[#allocation5 + $0x4c] sm:$0xf]  ;;  %v2242_v10 = vor.u32 %v2864_v2, %v2239_v3  ;;  %v1967_v11 = vld [vmem:[#allocation5 + $0x58] sm:$0xf0]  ;;  %v2929_v44 = vld [vmem:[#allocation8 + $0x170] sm:$0xf0] }
  0x52   :  { %751 = vmatpush.bf16.msrb.mxu0 %v2074_v56  ;;  %v2002_v56 = vor.u32 %v2804_v46, %v1999_v48  ;;  %v2860_v14 = vld [vmem:[#allocation5 + $0x24c] sm:$0xf]  ;;  %v2223_v15 = vld [vmem:[#allocation5 + $0x258] sm:$0xf0]  ;;  %v2477_v53 = vld [vmem:[#allocation8 + $0x150] sm:$0xf] }
  0x53   :  { %764 = vmatpush.bf16.msrb.mxu1 %v2202_v60  ;;  %v2866_v60 = vld [vmem:[#allocation5 + $0x274] sm:$0xf0]  ;;  %v2792_v21 = vld [vmem:[#allocation5 + $0x2c] sm:$0xf]  ;;  %v2226_v22 = vor.u32 %v2860_v14, %v2223_v15  ;;  %v2079_v25 = vld [vmem:[#allocation5 + $0x138] sm:$0xf0] }
  0x54   :  { %777 = vmatpush.bf16.msrb.mxu2 %v1950_v61  ;;  %790 = vmatpush.bf16.msrb.mxu3 %v2078_v1  ;;  %v2800_v61 = vld [vmem:[#allocation5 + $0x6c] sm:$0xf]  ;;  %v2111_v1 = vld [vmem:[#allocation5 + $0x178] sm:$0xf0]  ;;  %v2238_v4 = vor.u32 %v2866_v60, %v2237_v59  ;;  %v2899_v59 = vld [vmem:[#allocation8 + $0x80] sm:$0xf0] }
  0x55   :  { %v1986_v5 = vor.u32 %v2800_v61, %v1983_v63  ;;  %v2114_v6 = vor.u32 %v2832_v0, %v2111_v1  ;;  %v2824_v24 = vld [vmem:[#allocation5 + $0x12c] sm:$0xf]  ;;  %v2207_v27 = vld [vmem:[#allocation5 + $0x238] sm:$0xf0]  ;;  %v2357_v0 = vld [vmem:[#allocation8 + $0x60] sm:$0xf] }
  0x56   :  { %752 = vmatpush.bf16.msrb.mxu0 %v2058_v8  ;;  %v2862_v8 = vld [vmem:[#allocation5 + $0x254] sm:$0xf0]  ;;  %v2856_v26 = vld [vmem:[#allocation5 + $0x22c] sm:$0xf]  ;;  %v1935_v34 = vld [vmem:[#allocation5 + $0x18] sm:$0xf0] }
  0x57   :  { %765 = vmatpush.bf16.msrb.mxu1 %v2186_v12  ;;  %v2828_v12 = vld [vmem:[#allocation5 + $0x14c] sm:$0xf]  ;;  %v2063_v37 = vld [vmem:[#allocation5 + $0x118] sm:$0xf0]  ;;  %v2896_v1 = vld [vmem:[#allocation8 + $0x68] sm:$0xf0] }
  0x58   :  { %778 = vmatpush.bf16.msrb.mxu2 %v1934_v13  ;;  %791 = vmatpush.bf16.msrb.mxu3 %v2062_v16  ;;  %v2095_v13 = vld [vmem:[#allocation5 + $0x158] sm:$0xf0]  ;;  %v2222_v16 = vor.u32 %v2862_v8, %v2221_v7  ;;  %v2788_v33 = vld [vmem:[#allocation5 + $0xc] sm:$0xf]  ;;  %v2453_v3 = vld [vmem:[#allocation8 + $0x120] sm:$0xf] }
  0x59   :  { %753 = vmatmul.bf16.vlgmr.msrb.gmra.mxu0 %v3241_v57  ;;  %v2820_v36 = vld [vmem:[#allocation5 + $0x10c] sm:$0xf]  ;;  %v2191_v39 = vld [vmem:[#allocation5 + $0x218] sm:$0xf0]  ;;  %v1938_v45 = vor.u32 %v2788_v33, %v1935_v34  ;;  %v2893_v7 = vld [vmem:[#allocation8 + $0x50] sm:$0xf0] }
  0x5a   :  { %797 = vmatpush.bf16.msra.mxu0 %v2302_v17  ;;  %766 = vmatmul.bf16.vlgmr.msrb.gmra.mxu1 %v3237_v50  ;;  %v1970_v17 = vor.u32 %v2796_v9, %v1967_v11  ;;  %v2852_v38 = vld [vmem:[#allocation5 + $0x20c] sm:$0xf]  ;;  %v2066_v46 = vor.u32 %v2820_v36, %v2063_v37  ;;  %v2465_v61 = vld [vmem:[#allocation8 + $0x138] sm:$0xf]  ;;  %v2892_v34 = vld [vmem:[#allocation8 + $0x4c] sm:$0xf] }
  0x5b   :  { %810 = vmatpush.bf16.msra.mxu1 %v2050_v18  ;;  %779 = vmatmul.bf16.vlgmr.msrb.gmra.mxu2 %v3239_v54  ;;  %v2098_v18 = vor.u32 %v2828_v12, %v2095_v13  ;;  %v2393_v40 = vld [vmem:[#allocation8 + $0xa8] sm:$0xf]  ;;  %v2429_v12 = vld [vmem:[#allocation8 + $0xf0] sm:$0xf]  ;;  %v2914_v13 = vld [vmem:[#allocation8 + $0xf8] sm:$0xf0] }
  0x5c   :  { %823 = vmatpush.bf16.msra.mxu2 %v2178_v19  ;;  %836 = vmatpush.bf16.msra.mxu3 %v2306_v23  ;;  %v2205_v19 = vld [vmem:[#allocation5 + $0x228] sm:$0xf]  ;;  %v1951_v23 = vld [vmem:[#allocation5 + $0x38] sm:$0xf0]  ;;  %v2441_v8 = vld [vmem:[#allocation8 + $0x108] sm:$0xf] }
  0x5d   :  { %792 = vmatmul.bf16.vlgmr.msrb.gmra.mxu3 %v3241_v57  ;;  %v2206_v28 = vor.u32 %v2858_v20, %v2205_v19  ;;  %v2321_v15 = vld [vmem:[#allocation8 + $0x18] sm:$0xf]  ;;  %v2309_v19 = vld [vmem:[#allocation8] sm:$0xf]  ;;  %v2884_v20 = vld [vmem:[#allocation8 + $0x8] sm:$0xf0] }
  0x5e   :  { %798 = vmatpush.bf16.msra.mxu0 %v2286_v29  ;;  %v2189_v29 = vld [vmem:[#allocation5 + $0x208] sm:$0xf]  ;;  %v2417_v36 = vld [vmem:[#allocation8 + $0xd8] sm:$0xf] }
  0x5f   :  { %811 = vmatpush.bf16.msra.mxu1 %v2034_v30  ;;  %v1954_v30 = vor.u32 %v2792_v21, %v1951_v23  ;;  %v2904_v21 = vld [vmem:[#allocation8 + $0xac] sm:$0xf]  ;;  %v2310_v23 = vor.u32 %v2884_v20, %v2309_v19  ;;  %v2911_v37 = vld [vmem:[#allocation8 + $0xe0] sm:$0xf0]  ;;  %v2941_v19 = vld [vmem:[#allocation8 + $0x1d0] sm:$0xf0] }
  0x60   :  { %824 = vmatpush.bf16.msra.mxu2 %v2162_v31  ;;  %837 = vmatpush.bf16.msra.mxu3 %v2290_v35  ;;  %v2082_v31 = vor.u32 %v2824_v24, %v2079_v25  ;;  %v2210_v35 = vor.u32 %v2856_v26, %v2207_v27  ;;  %v2901_v25 = vld [vmem:[#allocation8 + $0x94] sm:$0xf]  ;;  %v2383_v26 = vld [vmem:[#allocation8 + $0x9c] sm:$0xf0]  ;;  %v2657_v20 = vld [vmem:[#allocation8 + $0x2b8] sm:$0xf] }
  0x61   :  { %v2386_v27 = vor.u32 %v2901_v25, %v2383_v26  ;;  %v2443_v25 = vld [vmem:[#allocation8 + $0x114] sm:$0xf0] }
  0x62   :  { %799 = vmatpush.bf16.msra.mxu0 %v2270_v41  ;;  %v2905_v41 = vld [vmem:[#allocation8 + $0xb0] sm:$0xf0] }
  0x63   :  { %812 = vmatpush.bf16.msra.mxu1 %v2018_v42  ;;  %v2190_v42 = vor.u32 %v2854_v32, %v2189_v29  ;;  %v2394_v48 = vor.u32 %v2905_v41, %v2393_v40  ;;  %v2371_v29 = vld [vmem:[#allocation8 + $0x84] sm:$0xf0]  ;;  %v2359_v32 = vld [vmem:[#allocation8 + $0x6c] sm:$0xf0]  ;;  %v2889_v40 = vld [vmem:[#allocation8 + $0x34] sm:$0xf] }
  0x64   :  { %825 = vmatpush.bf16.msra.mxu2 %v2146_v43  ;;  %838 = vmatpush.bf16.msra.mxu3 %v2274_v47  ;;  %v2489_v43 = vld [vmem:[#allocation8 + $0x168] sm:$0xf]  ;;  %v2194_v47 = vor.u32 %v2852_v38, %v2191_v39  ;;  %v2418_v38 = vor.u32 %v2911_v37, %v2417_v36  ;;  %v2335_v41 = vld [vmem:[#allocation8 + $0x3c] sm:$0xf0] }
  0x65   :  { %v2490_v52 = vor.u32 %v2929_v44, %v2489_v43  ;;  %v2953_v43 = vld [vmem:[#allocation8 + $0x230] sm:$0xf0]  ;;  %v2431_v36 = vld [vmem:[#allocation8 + $0xfc] sm:$0xf0] }
  0x66   :  { %800 = vmatpush.bf16.msra.mxu0 %v2254_v55  ;;  %v2926_v55 = vld [vmem:[#allocation8 + $0x158] sm:$0xf0] }
  0x67   :  { %813 = vmatpush.bf16.msra.mxu1 %v2002_v56  ;;  %v2382_v56 = vor.u32 %v2902_v51, %v2381_v49  ;;  %v2478_v60 = vor.u32 %v2926_v55, %v2477_v53  ;;  %v2886_v49 = vld [vmem:[#allocation8 + $0x1c] sm:$0xf]  ;;  %v2928_v51 = vld [vmem:[#allocation8 + $0x16c] sm:$0xf]  ;;  %v2323_v53 = vld [vmem:[#allocation8 + $0x24] sm:$0xf0] }
  0x68   :  { %826 = vmatpush.bf16.msra.mxu2 %v2130_v58  ;;  %839 = vmatpush.bf16.msra.mxu3 %v2258_v62  ;;  %v2369_v58 = vld [vmem:[#allocation8 + $0x78] sm:$0xf]  ;;  %v2923_v62 = vld [vmem:[#allocation8 + $0x140] sm:$0xf0] }
  0x69   :  { %v2370_v63 = vor.u32 %v2899_v59, %v2369_v58  ;;  %v2466_v2 = vor.u32 %v2923_v62, %v2465_v61  ;;  %v2950_v58 = vld [vmem:[#allocation8 + $0x218] sm:$0xf0]  ;;  %v2326_v61 = vor.u32 %v2886_v49, %v2323_v53  ;;  %v2883_v62 = vld [vmem:[#allocation8 + $0x4] sm:$0xf]  ;;  %v2932_v53 = vld [vmem:[#allocation8 + $0x188] sm:$0xf0] }
  0x6a   :  { %801 = vmatpush.bf16.msra.mxu0 %v2238_v4  ;;  %v2920_v4 = vld [vmem:[#allocation8 + $0x128] sm:$0xf0] }
  0x6b   :  { %814 = vmatpush.bf16.msra.mxu1 %v1986_v5  ;;  %v2358_v5 = vor.u32 %v2896_v1, %v2357_v0  ;;  %v2479_v0 = vld [vmem:[#allocation8 + $0x15c] sm:$0xf0] }
  0x6c   :  { %827 = vmatpush.bf16.msra.mxu2 %v2114_v6  ;;  %840 = vmatpush.bf16.msra.mxu3 %v2242_v10  ;;  %v2345_v6 = vld [vmem:[#allocation8 + $0x48] sm:$0xf]  ;;  %v2333_v10 = vld [vmem:[#allocation8 + $0x30] sm:$0xf] }
  0x6d   :  { %v2346_v9 = vor.u32 %v2893_v7, %v2345_v6  ;;  %v2977_v6 = vld [vmem:[#allocation8 + $0x2f0] sm:$0xf0]  ;;  %v2922_v7 = vld [vmem:[#allocation8 + $0x13c] sm:$0xf] }
  0x6e   :  { %802 = vmatpush.bf16.msra.mxu0 %v2222_v16  ;;  %v2887_v16 = vld [vmem:[#allocation8 + $0x20] sm:$0xf0] }
  0x6f   :  { %815 = vmatpush.bf16.msra.mxu1 %v1970_v17  ;;  %v2430_v17 = vor.u32 %v2914_v13, %v2429_v12  ;;  %v2974_v13 = vld [vmem:[#allocation8 + $0x2d8] sm:$0xf0] }
  0x70   :  { %828 = vmatpush.bf16.msra.mxu2 %v2098_v18  ;;  %841 = vmatpush.bf16.msra.mxu3 %v2226_v22  ;;  %v2322_v18 = vor.u32 %v2887_v16, %v2321_v15  ;;  %v2395_v22 = vld [vmem:[#allocation8 + $0xb4] sm:$0xf0]  ;;  %v2455_v15 = vld [vmem:[#allocation8 + $0x12c] sm:$0xf0] }
  0x71   :  { %v2398_v24 = vor.u32 %v2904_v21, %v2395_v22  ;;  %v2971_v22 = vld [vmem:[#allocation8 + $0x2c0] sm:$0xf0] }
  0x72   :  { %803 = vmatpush.bf16.msra.mxu0 %v2206_v28  ;;  %v2898_v28 = vld [vmem:[#allocation8 + $0x7c] sm:$0xf] }
  0x73   :  { %816 = vmatpush.bf16.msra.mxu1 %v1954_v30  ;;  %v2374_v30 = vor.u32 %v2898_v28, %v2371_v29  ;;  %v2938_v28 = vld [vmem:[#allocation8 + $0x1b8] sm:$0xf0]  ;;  %v2645_v29 = vld [vmem:[#allocation8 + $0x2a0] sm:$0xf] }
  0x74   :  { %829 = vmatpush.bf16.msra.mxu2 %v2082_v31  ;;  %842 = vmatpush.bf16.msra.mxu3 %v2210_v35  ;;  %v2895_v31 = vld [vmem:[#allocation8 + $0x64] sm:$0xf]  ;;  %v2347_v35 = vld [vmem:[#allocation8 + $0x54] sm:$0xf0] }
  0x75   :  { %v2362_v33 = vor.u32 %v2895_v31, %v2359_v32  ;;  %v2350_v39 = vor.u32 %v2892_v34, %v2347_v35  ;;  %v2968_v32 = vld [vmem:[#allocation8 + $0x2a8] sm:$0xf0]  ;;  %v2913_v35 = vld [vmem:[#allocation8 + $0xf4] sm:$0xf] }
  0x76   :  { %804 = vmatpush.bf16.msra.mxu0 %v2190_v42  ;;  %v2585_v42 = vld [vmem:[#allocation8 + $0x228] sm:$0xf]  ;;  %v2434_v37 = vor.u32 %v2913_v35, %v2431_v36  ;;  %v2671_v36 = vld [vmem:[#allocation8 + $0x2dc] sm:$0xf0] }
  0x77   :  { %817 = vmatpush.bf16.msra.mxu1 %v1938_v45  ;;  %v2586_v44 = vor.u32 %v2953_v43, %v2585_v42  ;;  %v2405_v45 = vld [vmem:[#allocation8 + $0xc0] sm:$0xf] }
  0x78   :  { %830 = vmatpush.bf16.msra.mxu2 %v2066_v46  ;;  %843 = vmatpush.bf16.msra.mxu3 %v2194_v47  ;;  %v2908_v46 = vld [vmem:[#allocation8 + $0xc8] sm:$0xf0]  ;;  %v2338_v47 = vor.u32 %v2889_v40, %v2335_v41  ;;  %v2633_v40 = vld [vmem:[#allocation8 + $0x288] sm:$0xf] }
  0x79   :  { %805 = vmatmul.bf16.vlgmr.msra.gmra.mxu0 %v3237_v50 }
  0x7a   :  { %1505 = vmatpush.bf16.msrb.mxu0 %v2394_v48  ;;  %818 = vmatmul.bf16.vlgmr.msra.gmra.mxu1 %v3239_v54  ;;  %v2454_v54 = vor.u32 %v2920_v4, %v2453_v3  ;;  %v2406_v48 = vor.u32 %v2908_v46, %v2405_v45  ;;  %v2947_v3 = vld [vmem:[#allocation8 + $0x200] sm:$0xf0]  ;;  %v2681_v4 = vld [vmem:[#allocation8 + $0x2e8] sm:$0xf] }
  0x7b   :  { %1518 = vmatpush.bf16.msrb.mxu1 %v2490_v52  ;;  %831 = vmatmul.bf16.vlgmr.msra.gmra.mxu2 %v3241_v57  ;;  %v2917_v57 = vld [vmem:[#allocation8 + $0x110] sm:$0xf0]  ;;  %v2491_v52 = vld [vmem:[#allocation8 + $0x174] sm:$0xf0] }
  0x7c   :  { %844 = vmatmul.bf16.vlgmr.msra.gmra.mxu3 %v3237_v50  ;;  %v2890_v50 = vld [vmem:[#allocation8 + $0x38] sm:$0xf0]  ;;  %v2442_v11 = vor.u32 %v2917_v57, %v2441_v8  ;;  %1531 = vmatpush.bf16.msrb.mxu2 %v2586_v44  ;;  %v2494_v55 = vor.u32 %v2928_v51, %v2491_v52  ;;  %v2682_v8 = vor.u32 %v2977_v6, %v2681_v4  ;;  %v2965_v44 = vld [vmem:[#allocation8 + $0x290] sm:$0xf0]  ;;  %v2501_v52 = vld [vmem:[#allocation8 + $0x180] sm:$0xf] }
  0x7d   :  { %v2334_v14 = vor.u32 %v2890_v50, %v2333_v10  ;;  %v2549_v10 = vld [vmem:[#allocation8 + $0x1e0] sm:$0xf]  ;;  %v2944_v50 = vld [vmem:[#allocation8 + $0x1e8] sm:$0xf0]  ;;  %v2634_v46 = vor.u32 %v2965_v44, %v2633_v40  ;;  %v2906_v4 = vld [vmem:[#allocation8 + $0xb8] sm:$0xf0] }
  0x7e   :  { %1506 = vmatpush.bf16.msrb.mxu0 %v2382_v56  ;;  %v2573_v56 = vld [vmem:[#allocation8 + $0x210] sm:$0xf]  ;;  %1544 = vmatpush.bf16.msrb.mxu3 %v2682_v8  ;;  %v2550_v12 = vor.u32 %v2944_v50, %v2549_v10  ;;  %v2949_v50 = vld [vmem:[#allocation8 + $0x214] sm:$0xf] }
  0x7f   :  { %1519 = vmatpush.bf16.msrb.mxu1 %v2478_v60  ;;  %v2574_v59 = vor.u32 %v2950_v58, %v2573_v56  ;;  %v2925_v60 = vld [vmem:[#allocation8 + $0x154] sm:$0xf]  ;;  %v2502_v56 = vor.u32 %v2932_v53, %v2501_v52  ;;  %v2962_v58 = vld [vmem:[#allocation8 + $0x278] sm:$0xf0]  ;;  %v2527_v53 = vld [vmem:[#allocation8 + $0x1bc] sm:$0xf0] }
  0x80   :  { %v2482_v1 = vor.u32 %v2925_v60, %v2479_v0  ;;  %v2587_v60 = vld [vmem:[#allocation8 + $0x234] sm:$0xf0]  ;;  %v2907_v0 = vld [vmem:[#allocation8 + $0xc4] sm:$0xf]  ;;  %v2897_v40 = vld [vmem:[#allocation8 + $0x70] sm:$0xf0] }
  0x81   :  { %1532 = vmatpush.bf16.msrb.mxu2 %v2574_v59  ;;  %v2952_v59 = vld [vmem:[#allocation8 + $0x22c] sm:$0xf]  ;;  %v2937_v52 = vld [vmem:[#allocation8 + $0x1b4] sm:$0xf] }
  0x82   :  { %1507 = vmatpush.bf16.msrb.mxu0 %v2370_v63  ;;  %v2311_v63 = vld [vmem:[#allocation8 + $0xc] sm:$0xf0] }
  0x83   :  { %1520 = vmatpush.bf16.msrb.mxu1 %v2466_v2  ;;  %v2561_v2 = vld [vmem:[#allocation8 + $0x1f8] sm:$0xf] }
  0x86   :  { %1508 = vmatpush.bf16.msrb.mxu0 %v2358_v5  ;;  %v2562_v5 = vor.u32 %v2947_v3, %v2561_v2  ;;  %v2401_v3 = vld [vmem:[#allocation8 + $0xb0] sm:$0xf] }
  0x87   :  { %1521 = vmatpush.bf16.msrb.mxu1 %v2454_v54  ;;  %v2467_v54 = vld [vmem:[#allocation8 + $0x144] sm:$0xf0] }
  0x88   :  { %v2470_v57 = vor.u32 %v2922_v7, %v2467_v54  ;;  %1533 = vmatpush.bf16.msrb.mxu2 %v2562_v5  ;;  %v2609_v7 = vld [vmem:[#allocation8 + $0x258] sm:$0xf]  ;;  %v2959_v54 = vld [vmem:[#allocation8 + $0x260] sm:$0xf0] }
  0x89   :  { %v2610_v10 = vor.u32 %v2959_v54, %v2609_v7  ;;  %v2635_v7 = vld [vmem:[#allocation8 + $0x294] sm:$0xf0] }
  0x8a   :  { %1509 = vmatpush.bf16.msrb.mxu0 %v2346_v9  ;;  %v2314_v9 = vor.u32 %v2883_v62, %v2311_v63  ;;  %v2590_v63 = vor.u32 %v2952_v59, %v2587_v60 }
  0x8b   :  { %1522 = vmatpush.bf16.msrb.mxu1 %v2442_v11  ;;  %v2669_v11 = vld [vmem:[#allocation8 + $0x2d0] sm:$0xf] }
  0x8c   :  { %v2670_v16 = vor.u32 %v2974_v13, %v2669_v11  ;;  %1534 = vmatpush.bf16.msrb.mxu2 %v2550_v12  ;;  %v2575_v11 = vld [vmem:[#allocation8 + $0x21c] sm:$0xf0]  ;;  %v2402_v12 = vor.u32 %v2906_v4, %v2401_v3 }
  0x8d   :  { %v2578_v13 = vor.u32 %v2949_v50, %v2575_v11  ;;  %v2930_v50 = vld [vmem:[#allocation8 + $0x178] sm:$0xf0] }
  0x8e   :  { %1510 = vmatpush.bf16.msrb.mxu0 %v2334_v14  ;;  %v2919_v14 = vld [vmem:[#allocation8 + $0x124] sm:$0xf]  ;;  %1545 = vmatpush.bf16.msrb.mxu3 %v2670_v16 }
  0x8f   :  { %1523 = vmatpush.bf16.msrb.mxu1 %v2430_v17  ;;  %v2458_v17 = vor.u32 %v2919_v14, %v2455_v15  ;;  %v2389_v15 = vld [vmem:[#allocation8 + $0x98] sm:$0xf]  ;;  %v2903_v16 = vld [vmem:[#allocation8 + $0xa0] sm:$0xf0] }
  0x92   :  { %1511 = vmatpush.bf16.msrb.mxu0 %v2322_v18  ;;  %v2537_v18 = vld [vmem:[#allocation8 + $0x1c8] sm:$0xf] }
  0x93   :  { %1524 = vmatpush.bf16.msrb.mxu1 %v2418_v38  ;;  %v2538_v21 = vor.u32 %v2941_v19, %v2537_v18  ;;  %v2513_v38 = vld [vmem:[#allocation8 + $0x198] sm:$0xf]  ;;  %v2956_v18 = vld [vmem:[#allocation8 + $0x248] sm:$0xf0]  ;;  %v2946_v19 = vld [vmem:[#allocation8 + $0x1fc] sm:$0xf] }
  0x95   :  { %1535 = vmatpush.bf16.msrb.mxu2 %v2538_v21  ;;  %v2563_v21 = vld [vmem:[#allocation8 + $0x204] sm:$0xf0] }
  0x96   :  { %1512 = vmatpush.bf16.msrb.mxu0 %v2310_v23  ;;  %v2916_v23 = vld [vmem:[#allocation8 + $0x10c] sm:$0xf] }
  0x97   :  { %1525 = vmatpush.bf16.msrb.mxu1 %v2406_v48  ;;  %v2446_v26 = vor.u32 %v2916_v23, %v2443_v25  ;;  %v2419_v48 = vld [vmem:[#allocation8 + $0xe4] sm:$0xf0]  ;;  %v2683_v23 = vld [vmem:[#allocation8 + $0x2f4] sm:$0xf0] }
  0x9a   :  { %1557 = vmatpush.bf16.msra.mxu0 %v2398_v24  ;;  %v2658_v24 = vor.u32 %v2971_v22, %v2657_v20  ;;  %v2976_v22 = vld [vmem:[#allocation8 + $0x2ec] sm:$0xf] }
  0x9b   :  { %1570 = vmatpush.bf16.msra.mxu1 %v2494_v55  ;;  %v2621_v55 = vld [vmem:[#allocation8 + $0x270] sm:$0xf] }
  0x9c   :  { %1546 = vmatpush.bf16.msrb.mxu3 %v2658_v24  ;;  %v2622_v62 = vor.u32 %v2962_v58, %v2621_v55  ;;  %v2390_v24 = vor.u32 %v2903_v16, %v2389_v15  ;;  %v2967_v55 = vld [vmem:[#allocation8 + $0x2a4] sm:$0xf]  ;;  %v2647_v58 = vld [vmem:[#allocation8 + $0x2ac] sm:$0xf0]  ;;  %v2961_v15 = vld [vmem:[#allocation8 + $0x274] sm:$0xf] }
  0x9d   :  { %v2650_v60 = vor.u32 %v2967_v55, %v2647_v58  ;;  %v2915_v55 = vld [vmem:[#allocation8 + $0x100] sm:$0xf0]  ;;  %v2425_v58 = vld [vmem:[#allocation8 + $0xe0] sm:$0xf] }
  0x9e   :  { %1558 = vmatpush.bf16.msra.mxu0 %v2386_v27  ;;  %v2525_v27 = vld [vmem:[#allocation8 + $0x1b0] sm:$0xf] }
  0x9f   :  { %1571 = vmatpush.bf16.msra.mxu1 %v2482_v1  ;;  %v2526_v31 = vor.u32 %v2938_v28, %v2525_v27  ;;  %v2407_v1 = vld [vmem:[#allocation8 + $0xcc] sm:$0xf0]  ;;  %v2686_v27 = vor.u32 %v2976_v22, %v2683_v23  ;;  %v2377_v28 = vld [vmem:[#allocation8 + $0x80] sm:$0xf] }
  0xa0   :  { %v2410_v5 = vor.u32 %v2907_v0, %v2407_v1  ;;  %v2934_v0 = vld [vmem:[#allocation8 + $0x19c] sm:$0xf]  ;;  %v2515_v1 = vld [vmem:[#allocation8 + $0x1a4] sm:$0xf0] }
  0xa1   :  { %1536 = vmatpush.bf16.msrb.mxu2 %v2526_v31 }
  0xa2   :  { %1559 = vmatpush.bf16.msra.mxu0 %v2374_v30  ;;  %v3255_v30 = vld [vmem:[#allocation7] sm:$0xf] }
  0xa3   :  { %1572 = vmatpush.bf16.msra.mxu1 %v2470_v57  ;;  %v205_v34 = vperm.slane %v3255_v30, 0 }
  0xa6   :  { %1560 = vmatpush.bf16.msra.mxu0 %v2362_v33  ;;  %v2646_v33 = vor.u32 %v2968_v32, %v2645_v29  ;;  %v2900_v29 = vld [vmem:[#allocation8 + $0x88] sm:$0xf0]  ;;  %v2943_v32 = vld [vmem:[#allocation8 + $0x1e4] sm:$0xf] }
  0xa7   :  { %1573 = vmatpush.bf16.msra.mxu1 %v2458_v17  ;;  %v2597_v17 = vld [vmem:[#allocation8 + $0x240] sm:$0xf] }
  0xa8   :  { %1547 = vmatpush.bf16.msrb.mxu3 %v2646_v33  ;;  %v2598_v20 = vor.u32 %v2956_v18, %v2597_v17  ;;  %v2551_v33 = vld [vmem:[#allocation8 + $0x1ec] sm:$0xf0]  ;;  %v2623_v18 = vld [vmem:[#allocation8 + $0x27c] sm:$0xf0] }
  0xa9   :  { %v2554_v35 = vor.u32 %v2943_v32, %v2551_v33  ;;  %v2626_v22 = vor.u32 %v2961_v15, %v2623_v18 }
  0xaa   :  { %1561 = vmatpush.bf16.msra.mxu0 %v2350_v39  ;;  %v2935_v39 = vld [vmem:[#allocation8 + $0x1a0] sm:$0xf0] }
  0xab   :  { %1574 = vmatpush.bf16.msra.mxu1 %v2446_v26  ;;  %v2514_v43 = vor.u32 %v2935_v39, %v2513_v38  ;;  %v2566_v26 = vor.u32 %v2946_v19, %v2563_v21  ;;  %v2365_v39 = vld [vmem:[#allocation8 + $0x68] sm:$0xf]  ;;  %v2885_v21 = vld [vmem:[#allocation8 + $0x10] sm:$0xf0] }
  0xac   :  { %1548 = vmatpush.bf16.msrb.mxu3 %v2634_v46  ;;  %v2366_v46 = vor.u32 %v2897_v40, %v2365_v39  ;;  %v2955_v39 = vld [vmem:[#allocation8 + $0x244] sm:$0xf]  ;;  %v2599_v40 = vld [vmem:[#allocation8 + $0x24c] sm:$0xf0] }
  0xad   :  { %1537 = vmatpush.bf16.msrb.mxu2 %v2514_v43  ;;  %v2970_v43 = vld [vmem:[#allocation8 + $0x2bc] sm:$0xf] }
  0xae   :  { %1562 = vmatpush.bf16.msra.mxu0 %v2338_v47  ;;  %v2910_v47 = vld [vmem:[#allocation8 + $0xdc] sm:$0xf] }
  0xaf   :  { %1575 = vmatpush.bf16.msra.mxu1 %v2434_v37  ;;  %v2422_v49 = vor.u32 %v2910_v47, %v2419_v48  ;;  %v2378_v37 = vor.u32 %v2900_v29, %v2377_v28  ;;  %v206_v48 = vperm.slane %v3255_v30, 1  ;;  %v2958_v28 = vld [vmem:[#allocation8 + $0x25c] sm:$0xf]  ;;  %v2611_v29 = vld [vmem:[#allocation8 + $0x264] sm:$0xf0] }
  0xb0   :  { %1549 = vmatpush.bf16.msrb.mxu3 %v2622_v62  ;;  %v2341_v62 = vld [vmem:[#allocation8 + $0x38] sm:$0xf] }
  0xb1   :  { %1538 = vmatpush.bf16.msrb.mxu2 %v2502_v56  ;;  %v2530_v56 = vor.u32 %v2937_v52, %v2527_v53  ;;  %v2437_v53 = vld [vmem:[#allocation8 + $0xf8] sm:$0xf] }
  0xb2   :  { %1563 = vmatpush.bf16.msra.mxu0 %v2326_v61 }
  0xb3   :  { %1576 = vmatpush.bf16.msra.mxu1 %v2422_v49  ;;  %v2353_v49 = vld [vmem:[#allocation8 + $0x50] sm:$0xf] }
  0xb4   :  { %1550 = vmatpush.bf16.msrb.mxu3 %v2610_v10 }
  0xb5   :  { %1583 = vmatpush.bf16.msra.mxu2 %v2590_v63  ;;  %v2891_v63 = vld [vmem:[#allocation8 + $0x40] sm:$0xf0] }
  0xb6   :  { %1564 = vmatpush.bf16.msra.mxu0 %v2314_v9  ;;  %v702_v41 = vpop.f32.mrf.mxu0  ;;  %v2342_v4 = vor.u32 %v2891_v63, %v2341_v62  ;;  %v208_v62 = vperm.slane %v3255_v30, 3 }
  0xb7   :  { %v715_v42 = vpop.f32.mrf.mxu1  ;;  %v703_v45 = vadd.f32 %v702_v41, %v205_v34  ;;  %1577 = vmatpush.bf16.msra.mxu1 %v2410_v5  ;;  %v2973_v34 = vld [vmem:[#allocation8 + $0x2d4] sm:$0xf]  ;;  %v2940_v41 = vld [vmem:[#allocation8 + $0x1cc] sm:$0xf]  ;;  %v2518_v5 = vor.u32 %v2934_v0, %v2515_v1 }
  0xb8   :  { %1551 = vmatpush.bf16.msrb.mxu3 %v2598_v20  ;;  %v2674_v38 = vor.u32 %v2973_v34, %v2671_v36  ;;  %v2317_v20 = vld [vmem:[#allocation8 + $0x8] sm:$0xf]  ;;  %v2614_v34 = vor.u32 %v2958_v28, %v2611_v29  ;;  %v2677_v28 = vld [vmem:[#allocation8 + $0x2d8] sm:$0xf]  ;;  %v2975_v29 = vld [vmem:[#allocation8 + $0x2e0] sm:$0xf0] }
  0xb9   :  { %v716_v51 = vadd.f32 %v715_v42, %v703_v45  ;;  %1584 = vmatpush.bf16.msra.mxu2 %v2578_v13  ;;  %v2539_v42 = vld [vmem:[#allocation8 + $0x1d4] sm:$0xf0]  ;;  %v2659_v45 = vld [vmem:[#allocation8 + $0x2c4] sm:$0xf0]  ;;  %v2503_v13 = vld [vmem:[#allocation8 + $0x18c] sm:$0xf0]  ;;  %v2318_v32 = vor.u32 %v2885_v21, %v2317_v20 }
  0xba   :  { %v2542_v44 = vor.u32 %v2940_v41, %v2539_v42  ;;  %v2662_v47 = vor.u32 %v2970_v43, %v2659_v45  ;;  %v2602_v41 = vor.u32 %v2955_v39, %v2599_v40  ;;  %v2921_v45 = vld [vmem:[#allocation8 + $0x130] sm:$0xf0]  ;;  %v2978_v20 = vld [vmem:[#allocation8 + $0x2f8] sm:$0xf0]  ;;  %v2533_v40 = vld [vmem:[#allocation8 + $0x1b8] sm:$0xf] }
  0xbc   :  { %1596 = vmatpush.bf16.msra.mxu3 %v2686_v27  ;;  %v2927_v27 = vld [vmem:[#allocation8 + $0x160] sm:$0xf0] }
  0xbd   :  { %1585 = vmatpush.bf16.msra.mxu2 %v2566_v26 }
  0xbe   :  { %v728_v61 = vpop.f32.mrf.mxu2  ;;  %v704_v57 = vpop.f32.mrf.mxu0 }
  0xbf   :  { %v729_v2 = vadd.f32 %v728_v61, %v716_v51  ;;  %v717_v9 = vpop.f32.mrf.mxu1  ;;  %v2894_v51 = vld [vmem:[#allocation8 + $0x58] sm:$0xf0]  ;;  %v2329_v57 = vld [vmem:[#allocation8 + $0x20] sm:$0xf] }
  0xc0   :  { %v3258_v6 = vpop.f32.mrf.mxu3  ;;  %1597 = vmatpush.bf16.msra.mxu3 %v2674_v38  ;;  %v2354_v59 = vor.u32 %v2894_v51, %v2353_v49  ;;  %v2888_v9 = vld [vmem:[#allocation8 + $0x28] sm:$0xf0]  ;;  %v2918_v49 = vld [vmem:[#allocation8 + $0x118] sm:$0xf0]  ;;  %v207_v51 = vperm.slane %v3255_v30, 2 }
  0xc1   :  { %v849_v8 = vmax.f32 %v729_v2, 0.0  ;;  %1586 = vmatpush.bf16.msra.mxu2 %v2554_v35  ;;  %v742_v61 = vadd.f32 %v3258_v6, %v206_v48  ;;  %v2964_v2 = vld [vmem:[#allocation8 + $0x28c] sm:$0xf]  ;;  %v2497_v6 = vld [vmem:[#allocation8 + $0x170] sm:$0xf]  ;;  %v2330_v16 = vor.u32 %v2888_v9, %v2329_v57 }
  0xc2   :  { %v2638_v10 = vor.u32 %v2964_v2, %v2635_v7  ;;  %v2498_v23 = vor.u32 %v2930_v50, %v2497_v6  ;;  %v2924_v38 = vld [vmem:[#allocation8 + $0x148] sm:$0xf0]  ;;  %v2449_v48 = vld [vmem:[#allocation8 + $0x110] sm:$0xf]  ;;  %v2951_v6 = vld [vmem:[#allocation8 + $0x220] sm:$0xf0] }
  0xc3   :  { %v3260_v14 = vpack.c.bf16 %v849_v8, %v849_v8  ;;  %v2450_v52 = vor.u32 %v2918_v49, %v2449_v48  ;;  %v2593_v2 = vld [vmem:[#allocation8 + $0x230] sm:$0xf]  ;;  %v2966_v49 = vld [vmem:[#allocation8 + $0x298] sm:$0xf0] }
  0xc4   :  { %1598 = vmatpush.bf16.msra.mxu3 %v2662_v47  ;;  %v2641_v48 = vld [vmem:[#allocation8 + $0x290] sm:$0xf] }
  0xc5   :  { %1513 = vmatmul.bf16.vlgmr.msrb.gmra.mxu0 %v3260_v14  ;;  %1587 = vmatpush.bf16.msra.mxu2 %v2542_v44  ;;  %v2461_v44 = vld [vmem:[#allocation8 + $0x128] sm:$0xf] }
  0xc6   :  { %1609 = vmatpush.bf16.msrb.mxu0 %v2402_v12  ;;  %v730_v25 = vpop.f32.mrf.mxu2  ;;  %v2931_v12 = vld [vmem:[#allocation8 + $0x184] sm:$0xf]  ;;  %v2462_v47 = vor.u32 %v2921_v45, %v2461_v44 }
  0xc7   :  { %v2506_v17 = vor.u32 %v2931_v12, %v2503_v13 }
  0xc8   :  { %v743_v31 = vpop.f32.mrf.mxu3  ;;  %1599 = vmatpush.bf16.msra.mxu3 %v2650_v60 }
  0xc9   :  { %1588 = vmatpush.bf16.msra.mxu2 %v2530_v56 }
  0xca   :  { %1610 = vmatpush.bf16.msrb.mxu0 %v2390_v24  ;;  %v2485_v24 = vld [vmem:[#allocation8 + $0x158] sm:$0xf] }
  0xcb   :  { %v2486_v36 = vor.u32 %v2927_v27, %v2485_v24  ;;  %v2557_v24 = vld [vmem:[#allocation8 + $0x1e8] sm:$0xf] }
  0xcc   :  { %1600 = vmatpush.bf16.msra.mxu3 %v2638_v10  ;;  %v2581_v10 = vld [vmem:[#allocation8 + $0x218] sm:$0xf] }
  0xcd   :  { %1589 = vmatpush.bf16.msra.mxu2 %v2518_v5  ;;  %v2909_v5 = vld [vmem:[#allocation8 + $0xd0] sm:$0xf0]  ;;  %v2582_v13 = vor.u32 %v2951_v6, %v2581_v10  ;;  %v2982_v6 = vld [vmem:[#allocation10 + $0x18] sm:$0xff] }
  0xce   :  { %1611 = vmatpush.bf16.msrb.mxu0 %v2378_v37  ;;  %v2473_v37 = vld [vmem:[#allocation8 + $0x140] sm:$0xf] }
  0xcf   :  { %v2474_v42 = vor.u32 %v2924_v38, %v2473_v37  ;;  %v2665_v37 = vld [vmem:[#allocation8 + $0x2c0] sm:$0xf]  ;;  %v2972_v38 = vld [vmem:[#allocation8 + $0x2c8] sm:$0xf0] }
  0xd0   :  { %1601 = vmatpush.bf16.msra.mxu3 %v2626_v22  ;;  %v2666_v39 = vor.u32 %v2972_v38, %v2665_v37  ;;  %v2997_v37 = vld [vmem:[#allocation10 + $0x90] sm:$0xff] }
  0xd1   :  { %1590 = vmatpush.bf16.msra.mxu2 %v2506_v17  ;;  %v2948_v17 = vld [vmem:[#allocation8 + $0x208] sm:$0xf0] }
  0xd2   :  { %1612 = vmatpush.bf16.msrb.mxu0 %v2366_v46 }
  0xd4   :  { %1602 = vmatpush.bf16.msra.mxu3 %v2614_v34  ;;  %v2678_v34 = vor.u32 %v2975_v29, %v2677_v28  ;;  %v985_v28 = vld [vmem:[%s3298_s4] sm:$0x7] }
  0xd5   :  { %1565 = vmatmul.bf16.vlgmr.msra.gmra.mxu0 %v3260_v14  ;;  %v2987_v29 = vld [vmem:[#allocation10 + $0x40] sm:$0xff] }
  0xd6   :  { %v754_v3 = vpop.f32.mrf.mxu0  ;;  %1613 = vmatpush.bf16.msrb.mxu0 %v2354_v59  ;;  %v2912_v59 = vld [vmem:[#allocation8 + $0xe8] sm:$0xf0] }
  0xd7   :  { %v755_v54 = vadd.f32 %v754_v3, %v742_v61  ;;  %v767_v8 = vpop.f32.mrf.mxu1  ;;  %v2426_v1 = vor.u32 %v2912_v59, %v2425_v58  ;;  %v2954_v3 = vld [vmem:[#allocation8 + $0x238] sm:$0xf0] }
  0xd8   :  { %1603 = vmatpush.bf16.msra.mxu3 %v2602_v41  ;;  %v2939_v41 = vld [vmem:[#allocation8 + $0x1c0] sm:$0xf0] }
  0xd9   :  { %v768_v11 = vadd.f32 %v767_v8, %v755_v54  ;;  %v2594_v8 = vor.u32 %v2954_v3, %v2593_v2  ;;  %v2534_v44 = vor.u32 %v2939_v41, %v2533_v40  ;;  %v2996_v41 = vld [vmem:[#allocation10 + $0x88] sm:$0xff] }
  0xda   :  { %1614 = vmatpush.bf16.msrb.mxu0 %v2342_v4  ;;  %v2413_v4 = vld [vmem:[#allocation8 + $0xc8] sm:$0xf] }
  0xdb   :  { %v850_v19 = vmax.f32 %v768_v11, 0.0  ;;  %v2414_v9 = vor.u32 %v2909_v5, %v2413_v4  ;;  %v2986_v4 = vld [vmem:[#allocation10 + $0x38] sm:$0xff]  ;;  %v2985_v5 = vld [vmem:[#allocation10 + $0x30] sm:$0xff] }
  0xdd   :  { %v3266_v25 = vpack.c.bf16 %v850_v19, %v850_v19  ;;  %v2689_v19 = vld [vmem:[#allocation8 + $0x2f0] sm:$0xf] }
  0xde   :  { %v780_v26 = vpop.f32.mrf.mxu2  ;;  %1615 = vmatpush.bf16.msrb.mxu0 %v2330_v16  ;;  %v756_v33 = vpop.f32.mrf.mxu0  ;;  %v2569_v16 = vld [vmem:[#allocation8 + $0x200] sm:$0xf] }
  0xdf   :  { %1526 = vmatmul.bf16.vlgmr.msrb.gmra.mxu1 %v3266_v25  ;;  %v769_v35 = vpop.f32.mrf.mxu1  ;;  %v781_v56 = vadd.f32 %v780_v26, %v207_v51  ;;  %v2570_v22 = vor.u32 %v2948_v17, %v2569_v16  ;;  %v2945_v26 = vld [vmem:[#allocation8 + $0x1f0] sm:$0xf0]  ;;  %v2979_v16 = vld [vmem:[#allocation10] sm:$0xff] }
  0xe0   :  { %v793_v31 = vpop.f32.mrf.mxu3  ;;  %1622 = vmatpush.bf16.msrb.mxu1 %v2498_v23  ;;  %v2690_v23 = vor.u32 %v2978_v20, %v2689_v19  ;;  %v2558_v33 = vor.u32 %v2945_v26, %v2557_v24  ;;  %v2545_v35 = vld [vmem:[#allocation8 + $0x1d0] sm:$0xf]  ;;  %v2991_v17 = vld [vmem:[#allocation10 + $0x60] sm:$0xff]  ;;  %v2990_v20 = vld [vmem:[#allocation10 + $0x58] sm:$0xff] }
  0xe1   :  { %v794_v60 = vadd.f32 %v793_v31, %v781_v56  ;;  %v2629_v56 = vld [vmem:[#allocation8 + $0x278] sm:$0xf]  ;;  %v2988_v26 = vld [vmem:[#allocation10 + $0x48] sm:$0xff] }
  0xe2   :  { %1616 = vmatpush.bf16.msrb.mxu0 %v2318_v32 }
  0xe4   :  { %1623 = vmatpush.bf16.msrb.mxu1 %v2486_v36  ;;  %v2942_v36 = vld [vmem:[#allocation8 + $0x1d8] sm:$0xf0] }
  0xe5   :  { %1617 = vmatmul.bf16.vlgmr.msrb.gmra.mxu0 %v3260_v14  ;;  %v2438_v14 = vor.u32 %v2915_v55, %v2437_v53  ;;  %v2509_v53 = vld [vmem:[#allocation8 + $0x188] sm:$0xf]  ;;  %v2933_v55 = vld [vmem:[#allocation8 + $0x190] sm:$0xf0] }
  0xe6   :  { %v782_v43 = vpop.f32.mrf.mxu2  ;;  %v2510_v58 = vor.u32 %v2933_v55, %v2509_v53  ;;  %1863 = vmatpush.bf16.msra.mxu0 %v2986_v4 }
  0xe7   :  { %v2969_v43 = vld [vmem:[#allocation8 + $0x2b0] sm:$0xf0] }
  0xe8   :  { %v795_v46 = vpop.f32.mrf.mxu3  ;;  %1624 = vmatpush.bf16.msrb.mxu1 %v2474_v42  ;;  %v2653_v42 = vld [vmem:[#allocation8 + $0x2a8] sm:$0xf] }
  0xe9   :  { %v2654_v45 = vor.u32 %v2969_v43, %v2653_v42  ;;  %v2521_v46 = vld [vmem:[#allocation8 + $0x1a0] sm:$0xf] }
  0xea   :  { %1864 = vmatpush.bf16.msra.mxu0 %v2985_v5 }
  0xec   :  { %1625 = vmatpush.bf16.msrb.mxu1 %v2462_v47  ;;  %v2936_v47 = vld [vmem:[#allocation8 + $0x1a8] sm:$0xf0] }
  0xed   :  { %v2522_v51 = vor.u32 %v2936_v47, %v2521_v46  ;;  %v988_v47 = vperm.slane %v985_v28, 1 }
  0xef   :  { %1578 = vmatmul.bf16.vlgmr.msra.gmra.mxu1 %v3266_v25 }
  0xf0   :  { %1626 = vmatpush.bf16.msrb.mxu1 %v2450_v52  ;;  %v2642_v52 = vor.u32 %v2966_v49, %v2641_v48 }
  0xf4   :  { %1627 = vmatpush.bf16.msrb.mxu1 %v2438_v14  ;;  %v2963_v14 = vld [vmem:[#allocation8 + $0x280] sm:$0xf0] }
  0xf5   :  { %v2630_v59 = vor.u32 %v2963_v14, %v2629_v56 }
  0xf6   :  { %v806_v61 = vpop.f32.mrf.mxu0 }
  0xf7   :  { %v807_v63 = vadd.f32 %v806_v61, %v794_v60  ;;  %v819_v0 = vpop.f32.mrf.mxu1  ;;  %v2617_v60 = vld [vmem:[#allocation8 + $0x260] sm:$0xf]  ;;  %v2960_v61 = vld [vmem:[#allocation8 + $0x268] sm:$0xf0] }
  0xf8   :  { %v820_v54 = vadd.f32 %v819_v0, %v208_v62  ;;  %1628 = vmatpush.bf16.msrb.mxu1 %v2426_v1  ;;  %v2618_v62 = vor.u32 %v2960_v61, %v2617_v60  ;;  %v2957_v0 = vld [vmem:[#allocation8 + $0x250] sm:$0xf0]  ;;  %v989_v60 = vperm.slane %v985_v28, 2 }
  0xf9   :  { %v851_v7 = vmax.f32 %v807_v63, 0.0  ;;  %v2605_v63 = vld [vmem:[#allocation8 + $0x248] sm:$0xf] }
  0xfa   :  { %v2606_v1 = vor.u32 %v2957_v0, %v2605_v63 }
  0xfb   :  { %v3273_v57 = vpack.c.bf16 %v851_v7, %v851_v7 }
  0xfc   :  { %1629 = vmatpush.bf16.msrb.mxu1 %v2414_v9 }
  0xfd   :  { %1539 = vmatmul.bf16.vlgmr.msrb.gmra.mxu2 %v3273_v57 }
  0xfe   :  { %v832_v50 = vpop.f32.mrf.mxu2  ;;  %v808_v12 = vpop.f32.mrf.mxu0  ;;  %1635 = vmatpush.bf16.msrb.mxu2 %v2594_v8  ;;  %v2983_v8 = vld [vmem:[#allocation10 + $0x20] sm:$0xff] }
  0xff   :  { %v833_v30 = vadd.f32 %v832_v50, %v820_v54  ;;  %v845_v11 = vpop.f32.mrf.mxu3  ;;  %v821_v15 = vpop.f32.mrf.mxu1  ;;  %1630 = vmatmul.bf16.vlgmr.msrb.gmra.mxu1 %v3266_v25  ;;  %v2546_v25 = vor.u32 %v2942_v36, %v2545_v35  ;;  %v2984_v54 = vld [vmem:[#allocation10 + $0x28] sm:$0xff]  ;;  %v2981_v50 = vld [vmem:[#allocation10 + $0x10] sm:$0xff]  ;;  %v2998_v35 = vld [vmem:[#allocation10 + $0x98] sm:$0xff] }
 0x100   :  { %1865 = vmatpush.bf16.msra.mxu0 %v2984_v54  ;;  %v2992_v15 = vld [vmem:[#allocation10 + $0x68] sm:$0xff] }
 0x101   :  { %v846_v18 = vadd.f32 %v845_v11, %v833_v30  ;;  %v2993_v30 = vld [vmem:[#allocation10 + $0x70] sm:$0xff] }
 0x102   :  { %1636 = vmatpush.bf16.msrb.mxu2 %v2582_v13  ;;  %v2980_v13 = vld [vmem:[#allocation10 + $0x8] sm:$0xff] }
 0x103   :  { %v852_v21 = vmax.f32 %v846_v18, 0.0 }
 0x104   :  { %1866 = vmatpush.bf16.msra.mxu0 %v2983_v8 }
 0x105   :  { %v856_v27 = vpack.c.bf16 %v852_v21, %v852_v21  ;;  %v3002_v21 = vld [vmem:[#allocation10 + $0xb8] sm:$0xff] }
 0x106   :  { %v834_v31 = vpop.f32.mrf.mxu2  ;;  %1637 = vmatpush.bf16.msrb.mxu2 %v2570_v22  ;;  %v2989_v22 = vld [vmem:[#allocation10 + $0x50] sm:$0xff] }
 0x107   :  { %v847_v32 = vpop.f32.mrf.mxu3  ;;  %1552 = vmatmul.bf16.vlgmr.msrb.gmra.mxu3 %v856_v27  ;;  %v2999_v31 = vld [vmem:[#allocation10 + $0xa0] sm:$0xff] }
 0x108   :  { %1648 = vmatpush.bf16.msrb.mxu3 %v2690_v23  ;;  %1867 = vmatpush.bf16.msra.mxu0 %v2982_v6  ;;  %v3001_v23 = vld [vmem:[#allocation10 + $0xb0] sm:$0xff]  ;;  %v987_v32 = vperm.slane %v985_v28, 0 }
 0x10a   :  { %1638 = vmatpush.bf16.msrb.mxu2 %v2558_v33 }
 0x10c   :  { %1649 = vmatpush.bf16.msrb.mxu3 %v2678_v34  ;;  %1868 = vmatpush.bf16.msra.mxu0 %v2981_v50 }
 0x10d   :  { %1591 = vmatmul.bf16.vlgmr.msra.gmra.mxu2 %v3273_v57 }
 0x10e   :  { %1639 = vmatpush.bf16.msrb.mxu2 %v2546_v25 }
 0x110   :  { %1650 = vmatpush.bf16.msrb.mxu3 %v2666_v39  ;;  %1869 = vmatpush.bf16.msra.mxu0 %v2980_v13 }
 0x112   :  { %1640 = vmatpush.bf16.msrb.mxu2 %v2534_v44 }
 0x114   :  { %1651 = vmatpush.bf16.msrb.mxu3 %v2654_v45  ;;  %1870 = vmatpush.bf16.msra.mxu0 %v2979_v16  ;;  %v2995_v45 = vld [vmem:[#allocation10 + $0x80] sm:$0xff] }
 0x116   :  { %1641 = vmatpush.bf16.msrb.mxu2 %v2522_v51 }
 0x117   :  { %1604 = vmatmul.bf16.vlgmr.msra.gmra.mxu3 %v856_v27 }
 0x118   :  { %1652 = vmatpush.bf16.msrb.mxu3 %v2642_v52 }
 0x11a   :  { %1642 = vmatpush.bf16.msrb.mxu2 %v2510_v58 }
 0x11c   :  { %1653 = vmatpush.bf16.msrb.mxu3 %v2630_v59 }
 0x11d   :  { %1643 = vmatmul.bf16.vlgmr.msrb.gmra.mxu2 %v3273_v57  ;;  %v2994_v57 = vld [vmem:[#allocation10 + $0x78] sm:$0xff] }
 0x11e   :  { %1876 = vmatpush.bf16.msra.mxu1 %v2994_v57  ;;  %1889 = vmatpush.bf16.msra.mxu2 %v3002_v21  ;;  %v3015_v57 = vld [vmem:[%s3300_s6] ss:$0 sm:$0xff] }
 0x120   :  { %1654 = vmatpush.bf16.msrb.mxu3 %v2618_v62 }
 0x122   :  { %1877 = vmatpush.bf16.msra.mxu1 %v2993_v30  ;;  %1890 = vmatpush.bf16.msra.mxu2 %v3001_v23 }
 0x124   :  { %1655 = vmatpush.bf16.msrb.mxu3 %v2606_v1 }
 0x126   :  { %1878 = vmatpush.bf16.msra.mxu1 %v2992_v15 }
 0x127   :  { %1656 = vmatmul.bf16.vlgmr.msrb.gmra.mxu3 %v856_v27  ;;  %v3000_v27 = vld [vmem:[#allocation10 + $0xa8] sm:$0xff] }
 0x128   :  { %1891 = vmatpush.bf16.msra.mxu2 %v3000_v27 }
 0x12a   :  { %1879 = vmatpush.bf16.msra.mxu1 %v2991_v17 }
 0x12c   :  { %1892 = vmatpush.bf16.msra.mxu2 %v2999_v31 }
 0x12e   :  { %1880 = vmatpush.bf16.msra.mxu1 %v2990_v20 }
 0x130   :  { %1893 = vmatpush.bf16.msra.mxu2 %v2998_v35 }
 0x132   :  { %1881 = vmatpush.bf16.msra.mxu1 %v2989_v22 }
 0x134   :  { %1894 = vmatpush.bf16.msra.mxu2 %v2997_v37 }
 0x136   :  { %1882 = vmatpush.bf16.msra.mxu1 %v2988_v26 }
 0x138   :  { %1895 = vmatpush.bf16.msra.mxu2 %v2996_v41 }
 0x13a   :  { %1883 = vmatpush.bf16.msra.mxu1 %v2987_v29 }
 0x13c   :  { %1896 = vmatpush.bf16.msra.mxu2 %v2995_v45 }
 0x142   :  { %v1514_v2 = vpop.f32.mrf.mxu0 }
 0x143   :  { %v1515_v36 = vadd.f32 %v1514_v2, %v987_v32 }
 0x14a   :  { %v1516_v3 = vpop.f32.mrf.mxu0 }
 0x152   :  { %v3279_v7 = vpop.f32.mrf.mxu0 }
 0x153   :  { %v1567_v51 = vadd.f32 %v3279_v7, %v988_v47 }
 0x15a   :  { %v1568_v9 = vpop.f32.mrf.mxu0 }
 0x15c   :  { %v1527_v10 = vpop.f32.mrf.mxu1 }
 0x15d   :  { %v1528_v38 = vadd.f32 %v1527_v10, %v1515_v36 }
 0x162   :  { %v3281_v11 = vpop.f32.mrf.mxu0 }
 0x163   :  { %v1619_v63 = vadd.f32 %v3281_v11, %v989_v60 }
 0x164   :  { %v1529_v12 = vpop.f32.mrf.mxu1 }
 0x16a   :  { %v1620_v18 = vpop.f32.mrf.mxu0 }
 0x16c   :  { %v1579_v19 = vpop.f32.mrf.mxu1 }
 0x16d   :  { %v1580_v52 = vadd.f32 %v1579_v19, %v1567_v51 }
 0x174   :  { %v1581_v24 = vpop.f32.mrf.mxu1 }
 0x17c   :  { %v1631_v33 = vpop.f32.mrf.mxu1 }
 0x17d   :  { %v1632_v0 = vadd.f32 %v1631_v33, %v1619_v63 }
 0x180   :  { %v1540_v34 = vpop.f32.mrf.mxu2 }
 0x181   :  { %v1541_v39 = vadd.f32 %v1540_v34, %v1528_v38 }
 0x184   :  { %v1633_v25 = vpop.f32.mrf.mxu1 }
 0x188   :  { %v1542_v40 = vpop.f32.mrf.mxu2 }
 0x18a   :  { %v1553_v42 = vpop.f32.mrf.mxu3 }
 0x18b   :  { %v1554_v43 = vadd.f32 %v1553_v42, %v1541_v39 }
 0x18d   :  { %v1661_v44 = vmax.f32 %v1554_v43, 0.0 }
 0x18f   :  { %v1664_v46 = vpack.c.bf16 %v1661_v44, %v1661_v44 }
 0x190   :  { %v1592_v48 = vpop.f32.mrf.mxu2 }
 0x191   :  { %1871 = vmatmul.bf16.vlgmr.msra.gmra.mxu0 %v1664_v46  ;;  %v1593_v53 = vadd.f32 %v1592_v48, %v1580_v52 }
 0x192   :  { %v1555_v49 = vpop.f32.mrf.mxu3 }
 0x198   :  { %v1594_v55 = vpop.f32.mrf.mxu2 }
 0x19a   :  { %v1605_v56 = vpop.f32.mrf.mxu3 }
 0x19b   :  { %v1606_v14 = vadd.f32 %v1605_v56, %v1593_v53 }
 0x19d   :  { %v1662_v58 = vmax.f32 %v1606_v14, 0.0 }
 0x19f   :  { %v1665_v59 = vpack.c.bf16 %v1662_v58, %v1662_v58 }
 0x1a0   :  { %v1644_v61 = vpop.f32.mrf.mxu2 }
 0x1a1   :  { %1884 = vmatmul.bf16.vlgmr.msra.gmra.mxu1 %v1665_v59  ;;  %v1645_v1 = vadd.f32 %v1644_v61, %v1632_v0 }
 0x1a2   :  { %v1607_v62 = vpop.f32.mrf.mxu3 }
 0x1a8   :  { %v1646_v2 = vpop.f32.mrf.mxu2 }
 0x1aa   :  { %v1657_v3 = vpop.f32.mrf.mxu3 }
 0x1ab   :  { %v1658_v4 = vadd.f32 %v1657_v3, %v1645_v1 }
 0x1ad   :  { %v1663_v5 = vmax.f32 %v1658_v4, 0.0 }
 0x1af   :  { %v1666_v7 = vpack.c.bf16 %v1663_v5, %v1663_v5 }
 0x1b1   :  { %1897 = vmatmul.bf16.vlgmr.msra.gmra.mxu2 %v1666_v7 }
 0x1b2   :  { %v1659_v54 = vpop.f32.mrf.mxu3 }
 0x20e   :  { %v1872_v8 = vpop.f32.mrf.mxu0 }
 0x20f   :  { %v1873_v50 = vadd.f32 %v3015_v57, %v1872_v8 }
 0x216   :  { %v1874_v9 = vpop.f32.mrf.mxu0 }
 0x21e   :  { %v1885_v10 = vpop.f32.mrf.mxu1 }
 0x21f   :  { %v1886_v30 = vadd.f32 %v1885_v10, %v1873_v50 }
 0x226   :  { %v1887_v6 = vpop.f32.mrf.mxu1 }
 0x234   :  { %v1898_v11 = vpop.f32.mrf.mxu2 }
 0x235   :  { %v1899_v12 = vadd.f32 %v1898_v11, %v1886_v30 }
 0x237   :  { %3016 = vtanh.f32 %v1899_v12 }
 0x23c   :  { %v1900_v13 = vpop.f32.mrf.mxu2 }
 0x23d   :  { %v3017_v15 = vpop.eup %3016 }
 0x23e   :  { %1903 = vst [vmem:[#allocation11] sm:$0xff] %v3017_v15 }
 0x23f   :  { %1914 = dma.vmem_to_hbm [thread:$0]  %s1910_s8, 128, %s1912_s11, [#allocation4]  }
 0x240   :  { %3168 = dma.done.wait [#allocation4], 128  }
 0x241   :  { %3169 = vsyncadd [#allocation4], 4294967168 }
 0x242   :  { %1919 = vsyncpa [#allocation3], 1 }
 0x243   :  { %1920 = vsyncpa [#allocation6], 1 }
 0x244   :  { %1921 = vsyncpa [#allocation9], 1 }
 0x245   :  { %1922 = vsyncpa [#allocation4], 1 }

</bundles_post_ra>
